<compile_context>
chip_gen: v7x
topology: tpu7x:2x2x1
jax: 0.10.0
libtpu: 0.0.40
codegen_flags: <defaults>
</compile_context>

<pallas_src>
import functools

import jax
import jax.numpy as jnp
from jax.experimental import pallas as pl
from jax.experimental.pallas import tpu as pltpu


def _round_up(a, b):
    return (a + b - 1) // b * b


# ------------------------------ Pallas kernel ------------------------------ #

def _cvae_fwd_kernel(x_ref, y_ref, eps_ref,
                     w1x_ref, w1y_ref, b1_ref,
                     w2_ref, b2_ref,
                     w3z_ref, w3y_ref, b3_ref,
                     w4_ref, b4_ref,
                     recon_ref, mu_ref, logstd_ref):
    """One batch tile of the whole forward; all intermediates stay in VMEM/vregs."""
    x = x_ref[...]          # (tm, Dx_p)  bf16
    y = y_ref[...]          # (tm, Dy_p)  bf16

    # encode: h1 = relu([x, y] @ W1 + b1)  -- concat folded into two MXU dots.
    h1 = jnp.dot(x, w1x_ref[...], preferred_element_type=jnp.float32)
    h1 = h1 + jnp.dot(y, w1y_ref[...], preferred_element_type=jnp.float32)
    h1 = jnp.maximum(h1 + b1_ref[...], 0.0)                      # f32 epilogue

    # fused mu|log_std head: one MXU dot on [W2_mu | W2_log_std].
    ms = jnp.dot(h1.astype(jnp.bfloat16), w2_ref[...],
                 preferred_element_type=jnp.float32) + b2_ref[...]
    L_p = mu_ref.shape[-1]
    mu = ms[:, :L_p]
    log_std = ms[:, L_p:]

    # reparametrize: z = mu + eps * exp(log_std)   (all f32)
    z = mu + eps_ref[...] * jnp.exp(log_std)

    # decode: h3 = relu([z, y] @ W3 + b3); recon = sigmoid(h3 @ W4 + b4)
    h3 = jnp.dot(z.astype(jnp.bfloat16), w3z_ref[...],
                 preferred_element_type=jnp.float32)
    h3 = h3 + jnp.dot(y, w3y_ref[...], preferred_element_type=jnp.float32)
    h3 = jnp.maximum(h3 + b3_ref[...], 0.0)

    logits = jnp.dot(h3.astype(jnp.bfloat16), w4_ref[...],
                     preferred_element_type=jnp.float32) + b4_ref[...]

    # sigmoid with the EUP approx reciprocal (VALU stays free).
    recon_ref[...] = pl.reciprocal(1.0 + jnp.exp(-logits), approx=True)
    mu_ref[...] = mu
    logstd_ref[...] = log_std


# ---------------------------- parameter plumbing ---------------------------- #

def _linear_init(key, fan_in, fan_out):
    # PyTorch nn.Linear default: U(-1/sqrt(fan_in), 1/sqrt(fan_in))
    kw, kb = jax.random.split(key)
    bound = float(fan_in) ** -0.5
    w = jax.random.uniform(kw, (fan_in, fan_out), jnp.float32, -bound, bound)
    b = jax.random.uniform(kb, (fan_out,), jnp.float32, -bound, bound)
    return w, b


def init_cvae(key, image_size, label_size, latent_size):
    """Logical (unpadded, f32) parameters matching the PyTorch module."""
    dx = image_size * image_size
    ks = jax.random.split(key, 5)
    w1, b1 = _linear_init(ks[0], dx + label_size, 200)
    w2m, b2m = _linear_init(ks[1], 200, latent_size)
    w2s, b2s = _linear_init(ks[2], 200, latent_size)
    w3, b3 = _linear_init(ks[3], latent_size + label_size, 200)   # fc3: 286 -> 200
    w4, b4 = _linear_init(ks[4], 200, dx)
    return {"w1": w1, "b1": b1, "w2m": w2m, "b2m": b2m,
            "w2s": w2s, "b2s": b2s, "w3": w3, "b3": b3, "w4": w4, "b4": b4}


def prepare_kernel_params(params, image_size, label_size, latent_size):
    """Split/concat/zero-pad weights to lane-aligned shapes; cast weights to bf16."""
    Dx, Dy, L, H = image_size * image_size, label_size, latent_size, 200
    Dx_p, Dy_p = _round_up(Dx, 128), _round_up(Dy, 128)
    L_p, H_p = _round_up(L, 128), _round_up(H, 128)

    def pad2(a, r, c):
        return jnp.pad(a, ((0, r - a.shape[0]), (0, c - a.shape[1])))

    w1 = params["w1"]                                   # (Dx+Dy, H)
    w1x = pad2(w1[:Dx], Dx_p, H_p)
    w1y = pad2(w1[Dx:], Dy_p, H_p)
    b1 = pad2(params["b1"].reshape(1, -1), 1, H_p)

    w2 = jnp.concatenate([pad2(params["w2m"], H_p, L_p),
                          pad2(params["w2s"], H_p, L_p)], axis=1)   # (H_p, 2*L_p)
    b2 = jnp.concatenate([pad2(params["b2m"].reshape(1, -1), 1, L_p),
                          pad2(params["b2s"].reshape(1, -1), 1, L_p)], axis=1)

    w3 = params["w3"]                                   # (L+Dy, H)
    w3z = pad2(w3[:L], L_p, H_p)
    w3y = pad2(w3[L:], Dy_p, H_p)
    b3 = pad2(params["b3"].reshape(1, -1), 1, H_p)

    w4 = pad2(params["w4"], H_p, Dx_p)
    b4 = pad2(params["b4"].reshape(1, -1), 1, Dx_p)

    bf = lambda a: a.astype(jnp.bfloat16)
    return {
        "w1x": bf(w1x), "w1y": bf(w1y), "b1": b1,
        "w2": bf(w2), "b2": b2,
        "w3z": bf(w3z), "w3y": bf(w3y), "b3": b3,
        "w4": bf(w4), "b4": b4,
        "dims": (Dx, Dy, L, Dx_p, Dy_p, L_p, H_p),
    }


# ---------------------------- pallas_call wrapper --------------------------- #

def _choose_tile_m(B):
    if B <= 256:
        return _round_up(max(B, 8), 8)         # single grid step
    # Large batches: big tiles amortize per-step overhead and MXU weight loads,
    # but keep >= 2 grid steps so both v7x TensorCores get work, and cap at 512
    # rows so per-step VMEM stays well inside v7x's 64 MiB.
    return min(512, _round_up(pl.cdiv(B, 2), 8))


def cvae_forward(kparams, x, y, eps):
    """Fused CVAE forward. Returns (recon, mu, log_std) in f32."""
    Dx, Dy, L, Dx_p, Dy_p, L_p, H_p = kparams["dims"]
    B = x.shape[0]
    tile_m = _choose_tile_m(B)
    Bp = _round_up(B, tile_m)

    # Zero-pad batch/feature dims to aligned sizes; cast activations to bf16
    # (halves input DMA traffic; the dots are bf16 anyway). eps stays f32.
    x = jnp.pad(x, ((0, Bp - B), (0, Dx_p - Dx))).astype(jnp.bfloat16)
    y = jnp.pad(y, ((0, Bp - B), (0, Dy_p - Dy))).astype(jnp.bfloat16)
    eps = jnp.pad(eps, ((0, Bp - B), (0, L_p - L)))

    grid = (Bp // tile_m,)

    def row_spec(d):
        return pl.BlockSpec((tile_m, d), lambda i: (i, 0))

    def const_spec(arr):
        # Constant index_map => DMA'd once, VMEM-resident across all grid steps.
        return pl.BlockSpec(arr.shape, lambda i: (0, 0))

    w_names = ["w1x", "w1y", "b1", "w2", "b2", "w3z", "w3y", "b3", "w4", "b4"]
    weights = [kparams[n] for n in w_names]

    in_specs = ([row_spec(Dx_p), row_spec(Dy_p), row_spec(L_p)]
                + [const_spec(w) for w in weights])
    out_specs = (row_spec(Dx_p), row_spec(L_p), row_spec(L_p))
    out_shape = (jax.ShapeDtypeStruct((Bp, Dx_p), jnp.float32),   # recon
                 jax.ShapeDtypeStruct((Bp, L_p), jnp.float32),    # mu
                 jax.ShapeDtypeStruct((Bp, L_p), jnp.float32))    # log_std

    flops = 2 * Bp * (Dx_p * H_p + Dy_p * H_p + H_p * 2 * L_p
                      + L_p * H_p + Dy_p * H_p + H_p * Dx_p)
    transcendentals = Bp * (L_p + 2 * Dx_p)
    bytes_accessed = (2 * Bp * (Dx_p + Dy_p)            # bf16 x, y
                      + 4 * Bp * L_p                    # f32 eps
                      + 4 * Bp * (Dx_p + 2 * L_p)       # f32 outputs
                      + sum(int(w.size) * w.dtype.itemsize for w in weights))

    recon, mu, log_std = pl.pallas_call(
        _cvae_fwd_kernel,
        grid=grid,
        in_specs=in_specs,
        out_specs=out_specs,
        out_shape=out_shape,
        compiler_params=pltpu.CompilerParams(
            dimension_semantics=("parallel",),
            vmem_limit_bytes=32 * 1024 * 1024),
        cost_estimate=pl.CostEstimate(
            flops=flops, transcendentals=transcendentals,
            bytes_accessed=bytes_accessed),
    )(x, y, eps, *weights)

    return recon[:B, :Dx], mu[:B, :L], log_std[:B, :L]


# ---------------------------- pure-JAX reference ---------------------------- #

def cvae_ref(p, x, y, eps):
    dot = functools.partial(jnp.dot, precision=jax.lax.Precision.HIGHEST)
    xy = jnp.concatenate([x, y], axis=1)
    h1 = jax.nn.relu(dot(xy, p["w1"]) + p["b1"])
    mu = dot(h1, p["w2m"]) + p["b2m"]
    log_std = dot(h1, p["w2s"]) + p["b2s"]
    z = mu + eps * jnp.exp(log_std)
    zy = jnp.concatenate([z, y], axis=1)
    h3 = jax.nn.relu(dot(zy, p["w3"]) + p["b3"])
    recon = jax.nn.sigmoid(dot(h3, p["w4"]) + p["b4"])
    return recon, mu, log_std


# ------------------------------------ main ---------------------------------- #

if __name__ == "__main__":
    key = jax.random.PRNGKey(0)
    # fc3 in the reference module is hard-coded to 286 inputs, so
    # latent_size + label_size must equal 286.
    image_size, label_size, latent_size = 16, 10, 276
    batch = 8

    k_x, k_y, k_eps, k_p = jax.random.split(key, 4)
    x = jax.random.normal(k_x, (batch, image_size * image_size), jnp.float32)
    labels = jax.random.randint(k_y, (batch,), 0, label_size)
    y = jax.nn.one_hot(labels, label_size, dtype=jnp.float32)
    eps = jax.random.normal(k_eps, (batch, latent_size), jnp.float32)

    params = init_cvae(k_p, image_size, label_size, latent_size)
    kparams = prepare_kernel_params(params, image_size, label_size, latent_size)

    recon, mu, log_std = cvae_forward(kparams, x, y, eps)
    jax.block_until_ready((recon, mu, log_std))

    assert recon.shape == (batch, image_size * image_size)
    assert mu.shape == (batch, latent_size)
    assert log_std.shape == (batch, latent_size)

    r_ref, m_ref, s_ref = cvae_ref(params, x, y, eps)
    # bf16 MXU operands (f32 accumulation) vs a HIGHEST-precision f32 reference:
    # tolerance loosened accordingly.
    assert jnp.allclose(mu, m_ref, atol=2e-2, rtol=2e-2)
    assert jnp.allclose(log_std, s_ref, atol=2e-2, rtol=2e-2)
    assert jnp.allclose(recon, r_ref, atol=2e-2, rtol=2e-2)

    print("KERNEL_OK")
</pallas_src>

<mosaic_0001>
module attributes {stable_mosaic.version = 11 : i64} {
  func.func @_cvae_fwd_kernel(%arg0: i32, %arg1: memref<8x256xbf16, #tpu.memory_space<vmem>>, %arg2: memref<8x128xbf16, #tpu.memory_space<vmem>>, %arg3: memref<8x384xf32, #tpu.memory_space<vmem>>, %arg4: memref<256x256xbf16, #tpu.memory_space<vmem>>, %arg5: memref<128x256xbf16, #tpu.memory_space<vmem>>, %arg6: memref<1x256xf32, #tpu.memory_space<vmem>>, %arg7: memref<256x768xbf16, #tpu.memory_space<vmem>>, %arg8: memref<1x768xf32, #tpu.memory_space<vmem>>, %arg9: memref<384x256xbf16, #tpu.memory_space<vmem>>, %arg10: memref<128x256xbf16, #tpu.memory_space<vmem>>, %arg11: memref<1x256xf32, #tpu.memory_space<vmem>>, %arg12: memref<256x256xbf16, #tpu.memory_space<vmem>>, %arg13: memref<1x256xf32, #tpu.memory_space<vmem>>, %arg14: memref<8x256xf32, #tpu.memory_space<vmem>>, %arg15: memref<8x384xf32, #tpu.memory_space<vmem>>, %arg16: memref<8x384xf32, #tpu.memory_space<vmem>>) attributes {dimension_semantics = [#tpu.dimension_semantics<parallel>], iteration_bounds = array<i64: 1>, scalar_prefetch = 0 : i64, scratch_operands = 0 : i64, tpu.core_type = #tpu.core_type<tc>, window_params = [{transform_indices = @transform_0, window_bounds = array<i64: 8, 256>}, {transform_indices = @transform_1, window_bounds = array<i64: 8, 128>}, {transform_indices = @transform_2, window_bounds = array<i64: 8, 384>}, {pipeline_mode = #tpu.pipeline_mode<synchronous>, transform_indices = @transform_3, window_bounds = array<i64: 256, 256>}, {pipeline_mode = #tpu.pipeline_mode<synchronous>, transform_indices = @transform_4, window_bounds = array<i64: 128, 256>}, {pipeline_mode = #tpu.pipeline_mode<synchronous>, transform_indices = @transform_5, window_bounds = array<i64: 1, 256>}, {pipeline_mode = #tpu.pipeline_mode<synchronous>, transform_indices = @transform_6, window_bounds = array<i64: 256, 768>}, {pipeline_mode = #tpu.pipeline_mode<synchronous>, transform_indices = @transform_7, window_bounds = array<i64: 1, 768>}, {pipeline_mode = #tpu.pipeline_mode<synchronous>, transform_indices = @transform_8, window_bounds = array<i64: 384, 256>}, {pipeline_mode = #tpu.pipeline_mode<synchronous>, transform_indices = @transform_9, window_bounds = array<i64: 128, 256>}, {pipeline_mode = #tpu.pipeline_mode<synchronous>, transform_indices = @transform_10, window_bounds = array<i64: 1, 256>}, {pipeline_mode = #tpu.pipeline_mode<synchronous>, transform_indices = @transform_11, window_bounds = array<i64: 256, 256>}, {pipeline_mode = #tpu.pipeline_mode<synchronous>, transform_indices = @transform_12, window_bounds = array<i64: 1, 256>}, {transform_indices = @transform_13, window_bounds = array<i64: 8, 256>}, {transform_indices = @transform_14, window_bounds = array<i64: 8, 384>}, {transform_indices = @transform_15, window_bounds = array<i64: 8, 384>}]} {
    %c0 = arith.constant 0 : index
    %c0_0 = arith.constant 0 : index
    %0 = vector.load %arg1[%c0, %c0_0] : memref<8x256xbf16, #tpu.memory_space<vmem>>, vector<8x256xbf16>
    %c0_1 = arith.constant 0 : index
    %c0_2 = arith.constant 0 : index
    %1 = vector.load %arg2[%c0_1, %c0_2] : memref<8x128xbf16, #tpu.memory_space<vmem>>, vector<8x128xbf16>
    %c0_3 = arith.constant 0 : index
    %c0_4 = arith.constant 0 : index
    %2 = vector.load %arg4[%c0_3, %c0_4] : memref<256x256xbf16, #tpu.memory_space<vmem>>, vector<256x256xbf16>
    %cst = arith.constant dense<0.000000e+00> : vector<8x256xf32>
    %3 = tpu.matmul %0, %2, %cst {dimension_numbers = #tpu.dot_dimension_numbers<[1], [0], [0], [1], [0, 0, 1, 1], [], []>} : vector<8x256xbf16>, vector<256x256xbf16>, vector<8x256xf32> -> vector<8x256xf32>
    %c0_5 = arith.constant 0 : index
    %c0_6 = arith.constant 0 : index
    %4 = vector.load %arg5[%c0_5, %c0_6] : memref<128x256xbf16, #tpu.memory_space<vmem>>, vector<128x256xbf16>
    %cst_7 = arith.constant dense<0.000000e+00> : vector<8x256xf32>
    %5 = tpu.matmul %1, %4, %cst_7 {dimension_numbers = #tpu.dot_dimension_numbers<[1], [0], [0], [1], [0, 0, 1, 1], [], []>} : vector<8x128xbf16>, vector<128x256xbf16>, vector<8x256xf32> -> vector<8x256xf32>
    %6 = arith.addf %3, %5 : vector<8x256xf32>
    %c0_8 = arith.constant 0 : index
    %c0_9 = arith.constant 0 : index
    %7 = vector.load %arg6[%c0_8, %c0_9] : memref<1x256xf32, #tpu.memory_space<vmem>>, vector<1x256xf32>
    %8 = vector.broadcast %7 : vector<1x256xf32> to vector<8x256xf32>
    %9 = arith.addf %6, %8 : vector<8x256xf32>
    %cst_10 = arith.constant 0.000000e+00 : f32
    %10 = vector.broadcast %cst_10 : f32 to vector<8x256xf32>
    %11 = arith.maximumf %9, %10 : vector<8x256xf32>
    %12 = arith.truncf %11 : vector<8x256xf32> to vector<8x256xbf16>
    %c0_11 = arith.constant 0 : index
    %c0_12 = arith.constant 0 : index
    %13 = vector.load %arg7[%c0_11, %c0_12] : memref<256x768xbf16, #tpu.memory_space<vmem>>, vector<256x768xbf16>
    %cst_13 = arith.constant dense<0.000000e+00> : vector<8x768xf32>
    %14 = tpu.matmul %12, %13, %cst_13 {dimension_numbers = #tpu.dot_dimension_numbers<[1], [0], [0], [1], [0, 0, 1, 1], [], []>} : vector<8x256xbf16>, vector<256x768xbf16>, vector<8x768xf32> -> vector<8x768xf32>
    %c0_14 = arith.constant 0 : index
    %c0_15 = arith.constant 0 : index
    %15 = vector.load %arg8[%c0_14, %c0_15] : memref<1x768xf32, #tpu.memory_space<vmem>>, vector<1x768xf32>
    %16 = vector.broadcast %15 : vector<1x768xf32> to vector<8x768xf32>
    %17 = arith.addf %14, %16 : vector<8x768xf32>
    %18 = vector.extract_strided_slice %17 {offsets = [0, 0], sizes = [8, 384], strides = [1, 1]} : vector<8x768xf32> to vector<8x384xf32>
    %19 = vector.extract_strided_slice %17 {offsets = [0, 384], sizes = [8, 384], strides = [1, 1]} : vector<8x768xf32> to vector<8x384xf32>
    %c0_16 = arith.constant 0 : index
    %c0_17 = arith.constant 0 : index
    %20 = vector.load %arg3[%c0_16, %c0_17] : memref<8x384xf32, #tpu.memory_space<vmem>>, vector<8x384xf32>
    %21 = math.exp %19 : vector<8x384xf32>
    %22 = arith.mulf %20, %21 : vector<8x384xf32>
    %23 = arith.addf %18, %22 : vector<8x384xf32>
    %24 = arith.truncf %23 : vector<8x384xf32> to vector<8x384xbf16>
    %c0_18 = arith.constant 0 : index
    %c0_19 = arith.constant 0 : index
    %25 = vector.load %arg9[%c0_18, %c0_19] : memref<384x256xbf16, #tpu.memory_space<vmem>>, vector<384x256xbf16>
    %cst_20 = arith.constant dense<0.000000e+00> : vector<8x256xf32>
    %26 = tpu.matmul %24, %25, %cst_20 {dimension_numbers = #tpu.dot_dimension_numbers<[1], [0], [0], [1], [0, 0, 1, 1], [], []>} : vector<8x384xbf16>, vector<384x256xbf16>, vector<8x256xf32> -> vector<8x256xf32>
    %c0_21 = arith.constant 0 : index
    %c0_22 = arith.constant 0 : index
    %27 = vector.load %arg10[%c0_21, %c0_22] : memref<128x256xbf16, #tpu.memory_space<vmem>>, vector<128x256xbf16>
    %cst_23 = arith.constant dense<0.000000e+00> : vector<8x256xf32>
    %28 = tpu.matmul %1, %27, %cst_23 {dimension_numbers = #tpu.dot_dimension_numbers<[1], [0], [0], [1], [0, 0, 1, 1], [], []>} : vector<8x128xbf16>, vector<128x256xbf16>, vector<8x256xf32> -> vector<8x256xf32>
    %29 = arith.addf %26, %28 : vector<8x256xf32>
    %c0_24 = arith.constant 0 : index
    %c0_25 = arith.constant 0 : index
    %30 = vector.load %arg11[%c0_24, %c0_25] : memref<1x256xf32, #tpu.memory_space<vmem>>, vector<1x256xf32>
    %31 = vector.broadcast %30 : vector<1x256xf32> to vector<8x256xf32>
    %32 = arith.addf %29, %31 : vector<8x256xf32>
    %cst_26 = arith.constant 0.000000e+00 : f32
    %33 = vector.broadcast %cst_26 : f32 to vector<8x256xf32>
    %34 = arith.maximumf %32, %33 : vector<8x256xf32>
    %35 = arith.truncf %34 : vector<8x256xf32> to vector<8x256xbf16>
    %c0_27 = arith.constant 0 : index
    %c0_28 = arith.constant 0 : index
    %36 = vector.load %arg12[%c0_27, %c0_28] : memref<256x256xbf16, #tpu.memory_space<vmem>>, vector<256x256xbf16>
    %cst_29 = arith.constant dense<0.000000e+00> : vector<8x256xf32>
    %37 = tpu.matmul %35, %36, %cst_29 {dimension_numbers = #tpu.dot_dimension_numbers<[1], [0], [0], [1], [0, 0, 1, 1], [], []>} : vector<8x256xbf16>, vector<256x256xbf16>, vector<8x256xf32> -> vector<8x256xf32>
    %c0_30 = arith.constant 0 : index
    %c0_31 = arith.constant 0 : index
    %38 = vector.load %arg13[%c0_30, %c0_31] : memref<1x256xf32, #tpu.memory_space<vmem>>, vector<1x256xf32>
    %39 = vector.broadcast %38 : vector<1x256xf32> to vector<8x256xf32>
    %40 = arith.addf %37, %39 : vector<8x256xf32>
    %cst_32 = arith.constant 0.000000e+00 : f32
    %41 = vector.broadcast %cst_32 : f32 to vector<8x256xf32>
    %42 = arith.subf %41, %40 : vector<8x256xf32>
    %43 = math.exp %42 : vector<8x256xf32>
    %cst_33 = arith.constant 1.000000e+00 : f32
    %44 = vector.broadcast %cst_33 : f32 to vector<8x256xf32>
    %45 = arith.addf %44, %43 : vector<8x256xf32>
    %46 = tpu.reciprocal %45 {approx = true} : vector<8x256xf32> -> vector<8x256xf32>
    %c0_34 = arith.constant 0 : index
    %c0_35 = arith.constant 0 : index
    %47 = vector.load %arg14[%c0_34, %c0_35] : memref<8x256xf32, #tpu.memory_space<vmem>>, vector<8x256xf32>
    tpu.vector_store %arg14[%c0_34, %c0_35], %46 {strides = array<i32>} : memref<8x256xf32, #tpu.memory_space<vmem>>, vector<8x256xf32>,
    %c0_36 = arith.constant 0 : index
    %c0_37 = arith.constant 0 : index
    %48 = vector.load %arg15[%c0_36, %c0_37] : memref<8x384xf32, #tpu.memory_space<vmem>>, vector<8x384xf32>
    tpu.vector_store %arg15[%c0_36, %c0_37], %18 {strides = array<i32>} : memref<8x384xf32, #tpu.memory_space<vmem>>, vector<8x384xf32>,
    %c0_38 = arith.constant 0 : index
    %c0_39 = arith.constant 0 : index
    %49 = vector.load %arg16[%c0_38, %c0_39] : memref<8x384xf32, #tpu.memory_space<vmem>>, vector<8x384xf32>
    tpu.vector_store %arg16[%c0_38, %c0_39], %19 {strides = array<i32>} : memref<8x384xf32, #tpu.memory_space<vmem>>, vector<8x384xf32>,
    return
  }
  func.func @transform_0(%arg0: i32) -> (i32, i32) {
    %c0_i32 = arith.constant 0 : i32
    %c0_i32_0 = arith.constant 0 : i32
    return %arg0, %c0_i32 : i32, i32
  }
  func.func @transform_1(%arg0: i32) -> (i32, i32) {
    %c0_i32 = arith.constant 0 : i32
    %c0_i32_0 = arith.constant 0 : i32
    return %arg0, %c0_i32 : i32, i32
  }
  func.func @transform_2(%arg0: i32) -> (i32, i32) {
    %c0_i32 = arith.constant 0 : i32
    %c0_i32_0 = arith.constant 0 : i32
    return %arg0, %c0_i32 : i32, i32
  }
  func.func @transform_3(%arg0: i32) -> (i32, i32) {
    %c0_i32 = arith.constant 0 : i32
    %c0_i32_0 = arith.constant 0 : i32
    %c0_i32_1 = arith.constant 0 : i32
    return %c0_i32, %c0_i32_0 : i32, i32
  }
  func.func @transform_4(%arg0: i32) -> (i32, i32) {
    %c0_i32 = arith.constant 0 : i32
    %c0_i32_0 = arith.constant 0 : i32
    %c0_i32_1 = arith.constant 0 : i32
    return %c0_i32, %c0_i32_0 : i32, i32
  }
  func.func @transform_5(%arg0: i32) -> (i32, i32) {
    %c0_i32 = arith.constant 0 : i32
    %c0_i32_0 = arith.constant 0 : i32
    %c0_i32_1 = arith.constant 0 : i32
    return %c0_i32, %c0_i32_0 : i32, i32
  }
  func.func @transform_6(%arg0: i32) -> (i32, i32) {
    %c0_i32 = arith.constant 0 : i32
    %c0_i32_0 = arith.constant 0 : i32
    %c0_i32_1 = arith.constant 0 : i32
    return %c0_i32, %c0_i32_0 : i32, i32
  }
  func.func @transform_7(%arg0: i32) -> (i32, i32) {
    %c0_i32 = arith.constant 0 : i32
    %c0_i32_0 = arith.constant 0 : i32
    %c0_i32_1 = arith.constant 0 : i32
    return %c0_i32, %c0_i32_0 : i32, i32
  }
  func.func @transform_8(%arg0: i32) -> (i32, i32) {
    %c0_i32 = arith.constant 0 : i32
    %c0_i32_0 = arith.constant 0 : i32
    %c0_i32_1 = arith.constant 0 : i32
    return %c0_i32, %c0_i32_0 : i32, i32
  }
  func.func @transform_9(%arg0: i32) -> (i32, i32) {
    %c0_i32 = arith.constant 0 : i32
    %c0_i32_0 = arith.constant 0 : i32
    %c0_i32_1 = arith.constant 0 : i32
    return %c0_i32, %c0_i32_0 : i32, i32
  }
  func.func @transform_10(%arg0: i32) -> (i32, i32) {
    %c0_i32 = arith.constant 0 : i32
    %c0_i32_0 = arith.constant 0 : i32
    %c0_i32_1 = arith.constant 0 : i32
    return %c0_i32, %c0_i32_0 : i32, i32
  }
  func.func @transform_11(%arg0: i32) -> (i32, i32) {
    %c0_i32 = arith.constant 0 : i32
    %c0_i32_0 = arith.constant 0 : i32
    %c0_i32_1 = arith.constant 0 : i32
    return %c0_i32, %c0_i32_0 : i32, i32
  }
  func.func @transform_12(%arg0: i32) -> (i32, i32) {
    %c0_i32 = arith.constant 0 : i32
    %c0_i32_0 = arith.constant 0 : i32
    %c0_i32_1 = arith.constant 0 : i32
    return %c0_i32, %c0_i32_0 : i32, i32
  }
  func.func @transform_13(%arg0: i32) -> (i32, i32) {
    %c0_i32 = arith.constant 0 : i32
    %c0_i32_0 = arith.constant 0 : i32
    return %arg0, %c0_i32 : i32, i32
  }
  func.func @transform_14(%arg0: i32) -> (i32, i32) {
    %c0_i32 = arith.constant 0 : i32
    %c0_i32_0 = arith.constant 0 : i32
    return %arg0, %c0_i32 : i32, i32
  }
  func.func @transform_15(%arg0: i32) -> (i32, i32) {
    %c0_i32 = arith.constant 0 : i32
    %c0_i32_0 = arith.constant 0 : i32
    return %arg0, %c0_i32 : i32, i32
  }
}

</mosaic_0001>

<bundles_post_ra>
// kernel: tpu_custom_call.1
= control target key start
LH: loop header
LB: loop body
LE: loop exit
PB: predicated region body
PF: predicated region fallthrough
CT: control target
= control target key end

     0   :  { %21 = vsyncpa [#allocation3], 0  ;;  %s3372_s0 = inlined_call_operand.hbm [shape: bf16[8,256], index: 0, kind: input, shape index: {}]   ;;  %s3373_s1 = inlined_call_operand.hbm [shape: bf16[8,128], index: 1, kind: input, shape index: {}]   ;;  %s3374_s2 = inlined_call_operand.hbm [shape: f32[8,384], index: 2, kind: input, shape index: {}]   ;;  %s3375_s3 = inlined_call_operand.hbm [shape: bf16[256,256], index: 3, kind: input, shape index: {}]   ;;  %s3376_s4 = inlined_call_operand.hbm [shape: bf16[128,256], index: 4, kind: input, shape index: {}]   ;;  %s3377_s5 = inlined_call_operand.vmem [shape: f32[1,256], index: 5, kind: input, shape index: {}]   ;;  %s3378_s6 = inlined_call_operand.hbm [shape: bf16[256,768], index: 6, kind: input, shape index: {}]   ;;  %s3379_s7 = inlined_call_operand.vmem [shape: f32[1,768], index: 7, kind: input, shape index: {}]   ;;  %s3380_s8 = inlined_call_operand.hbm [shape: bf16[384,256], index: 8, kind: input, shape index: {}]   ;;  %s3381_s9 = inlined_call_operand.hbm [shape: bf16[128,256], index: 9, kind: input, shape index: {}]   ;;  %s3382_s10 = inlined_call_operand.vmem [shape: f32[1,256], index: 10, kind: input, shape index: {}]   ;;  %s3383_s11 = inlined_call_operand.hbm [shape: bf16[256,256], index: 11, kind: input, shape index: {}]   ;;  %s3384_s12 = inlined_call_operand.vmem [shape: f32[1,256], index: 12, kind: input, shape index: {}]   ;;  %s3385_s13 = inlined_call_operand.hbm [shape: f32[8,256], index: 13, kind: output, shape index: {0}]   ;;  %s3386_s14 = inlined_call_operand.hbm [shape: f32[8,384], index: 14, kind: output, shape index: {1}]   ;;  %s3387_s15 = inlined_call_operand.hbm [shape: f32[8,384], index: 15, kind: output, shape index: {2}]  }
   0x1   :  { %22 = vsyncpa [#allocation6], 0 }
   0x2   :  { %23 = vsyncpa [#allocation9], 0 }
   0x3   :  { %24 = vsyncpa [#allocation12], 0 }
   0x4   :  { %25 = vsyncpa [#allocation15], 0 }
   0x5   :  { %26 = vsyncpa [#allocation4], 0 }
   0x6   :  { %27 = vsyncpa [#allocation19], 0  ;;  %s3059_s18 = smov [#allocation5]   ;;  %s3060_s20 = smov [#allocation8]  }
   0x7   :  { %s44_s19 = sshll.u32 %s3059_s18, 4  ;;  %s63_s21 = sshll.u32 %s3060_s20, 4  ;;  %s45_s19 = int_to_ptr.vmem [resolvable:$true] %s44_s19  ;;  %s3156_s21 = int_to_ptr.vmem [resolvable:$true] %s63_s21 }
   0x8   :  { %s2781_s24 = scalar_lea.hbm %s3373_s1, 64 }
   0x9   :  { %p2782_p0 = scmp.ne.s32.totalorder %s3373_s1, %s2781_s24  ;;  %p2785_p1 = scmp.lt.u32.totalorder %s2781_s24, %s3373_s1 }
   0xb   :  { %p2787_p2 = pnand %p2785_p1, %p2782_p0 }
   0xd   :  { %2790 = shalt.err (!%p2787_p2)
}
   0xe   :  { %s2791_s29 = scalar_lea.vmem %s45_s19, 64  ;;  %p2796_p4 = scmp.lt.s32.totalorder %s45_s19, %s45_s19 }
   0xf   :  { %p2792_p3 = scmp.ne.s32.totalorder %s45_s19, %s2791_s29  ;;  %p2797_p5 = scmp.lt.s32.totalorder %s2791_s29, %s2791_s29 }
  0x11   :  { %p2798_p6 = por %p2797_p5, %p2796_p4 }
  0x13   :  { %p2799_p7 = pnand %p2798_p6, %p2792_p3 }
  0x15   :  { %2802 = shalt.err (!%p2799_p7)
}
  0x16   :  { %47 = dma.hbm_to_vmem [thread:$0]  %s3373_s1, 64, %s45_s19, [#allocation6]  }
  0x17   :  { %s2803_s20 = scalar_lea.hbm %s3375_s3, 4096 }
  0x18   :  { %p2804_p8 = scmp.ne.s32.totalorder %s3375_s3, %s2803_s20  ;;  %p2807_p9 = scmp.lt.u32.totalorder %s2803_s20, %s3375_s3 }
  0x1a   :  { %p2809_p10 = pnand %p2807_p9, %p2804_p8 }
  0x1c   :  { %2812 = shalt.err (!%p2809_p10)
}
  0x1d   :  { %s2813_s26 = scalar_lea.vmem %s3156_s21, 4096  ;;  %p2818_p12 = scmp.lt.s32.totalorder %s3156_s21, %s3156_s21 }
  0x1e   :  { %p2814_p11 = scmp.ne.s32.totalorder %s3156_s21, %s2813_s26  ;;  %p2819_p13 = scmp.lt.s32.totalorder %s2813_s26, %s2813_s26 }
  0x20   :  { %p2820_p0 = por %p2819_p13, %p2818_p12 }
  0x22   :  { %p2821_p1 = pnand %p2820_p0, %p2814_p11 }
  0x24   :  { %2824 = shalt.err (!%p2821_p1)
}
  0x25   :  { %s3388_s1 = smov 128   ;;  %s3062_s19 = smov 8  }
  0x26   :  { %69 = dma.hbm_to_vmem [thread:$0]  %s3375_s3, 4096, %s3156_s21, [#allocation9], %s3388_s1, %s3388_s1, %s3062_s19  }
  0x27   :  { %s3063_s29 = smov [#allocation11]   ;;  %s2825_s18 = scalar_lea.hbm %s3378_s6, 12288 }
  0x28   :  { %s89_s30 = sshll.u32 %s3063_s29, 4  ;;  %p2826_p2 = scmp.ne.s32.totalorder %s3378_s6, %s2825_s18  ;;  %s90_s30 = int_to_ptr.vmem [resolvable:$true] %s89_s30 }
  0x29   :  { %p2829_p3 = scmp.lt.u32.totalorder %s2825_s18, %s3378_s6 }
  0x2b   :  { %p2831_p4 = pnand %p2829_p3, %p2826_p2 }
  0x2d   :  { %2834 = shalt.err (!%p2831_p4)
}
  0x2e   :  { %s2835_s25 = scalar_lea.vmem %s90_s30, 12288  ;;  %p2840_p6 = scmp.lt.s32.totalorder %s90_s30, %s90_s30 }
  0x2f   :  { %p2836_p5 = scmp.ne.s32.totalorder %s90_s30, %s2835_s25  ;;  %p2841_p7 = scmp.lt.s32.totalorder %s2835_s25, %s2835_s25 }
  0x31   :  { %p2842_p8 = por %p2841_p7, %p2840_p6 }
  0x33   :  { %p2843_p9 = pnand %p2842_p8, %p2836_p5 }
  0x35   :  { %2846 = shalt.err (!%p2843_p9)
}
  0x36   :  { %s3064_s3 = smov 384   ;;  %s3065_s21 = smov 24  }
  0x37   :  { %95 = dma.hbm_to_vmem [thread:$0]  %s3378_s6, 12288, %s90_s30, [#allocation12], %s3064_s3, %s3064_s3, %s3065_s21  }
  0x38   :  { %s3066_s28 = smov [#allocation14]   ;;  %s3067_s16 = smov [#allocation2]  }
  0x39   :  { %s115_s29 = sshll.u32 %s3066_s28, 4  ;;  %s34_s17 = sshll.u32 %s3067_s16, 4  ;;  %s116_s29 = int_to_ptr.vmem [resolvable:$true] %s115_s29  ;;  %s35_s17 = int_to_ptr.vmem [resolvable:$true] %s34_s17 }
  0x3a   :  { %s2847_s22 = scalar_lea.hbm %s3381_s9, 2048 }
  0x3b   :  { %p2848_p10 = scmp.ne.s32.totalorder %s3381_s9, %s2847_s22  ;;  %p2851_p11 = scmp.lt.u32.totalorder %s2847_s22, %s3381_s9 }
  0x3d   :  { %p2853_p12 = pnand %p2851_p11, %p2848_p10 }
  0x3f   :  { %2856 = shalt.err (!%p2853_p12)
}
  0x40   :  { %s2857_s6 = scalar_lea.vmem %s116_s29, 2048  ;;  %p2862_p0 = scmp.lt.s32.totalorder %s116_s29, %s116_s29 }
  0x41   :  { %p2858_p13 = scmp.ne.s32.totalorder %s116_s29, %s2857_s6  ;;  %p2863_p1 = scmp.lt.s32.totalorder %s2857_s6, %s2857_s6 }
  0x43   :  { %p2864_p2 = por %p2863_p1, %p2862_p0 }
  0x45   :  { %p2865_p3 = pnand %p2864_p2, %p2858_p13 }
  0x47   :  { %2868 = shalt.err (!%p2865_p3)
}
  0x48   :  { %s3390_s30 = smov 128   ;;  %s2869_s27 = scalar_lea.hbm %s3372_s0, 128 }
  0x49   :  { %121 = dma.hbm_to_vmem [thread:$0]  %s3381_s9, 2048, %s116_s29, [#allocation15], %s3390_s30, %s3390_s30, %s3062_s19  }
  0x4a   :  { %p2870_p4 = scmp.ne.s32.totalorder %s3372_s0, %s2869_s27  ;;  %p2873_p5 = scmp.lt.u32.totalorder %s2869_s27, %s3372_s0 }
  0x4c   :  { %p2875_p6 = pnand %p2873_p5, %p2870_p4 }
  0x4e   :  { %2878 = shalt.err (!%p2875_p6)
}
  0x4f   :  { %s2879_s22 = scalar_lea.vmem %s35_s17, 128  ;;  %p2884_p8 = scmp.lt.s32.totalorder %s35_s17, %s35_s17 }
  0x50   :  { %p2880_p7 = scmp.ne.s32.totalorder %s35_s17, %s2879_s22  ;;  %p2885_p9 = scmp.lt.s32.totalorder %s2879_s22, %s2879_s22 }
  0x52   :  { %p2886_p10 = por %p2885_p9, %p2884_p8 }
  0x54   :  { %p2887_p11 = pnand %p2886_p10, %p2880_p7 }
  0x56   :  { %2890 = shalt.err (!%p2887_p11)
}
  0x57   :  { %37 = dma.hbm_to_vmem [thread:$0]  %s3372_s0, 128, %s35_s17, [#allocation3]  }
  0x58   :  { %s3068_s23 = smov [#allocation7]   ;;  %s3069_s25 = smov [#allocation10]  }
  0x59   :  { %s54_s24 = sshll.u32 %s3068_s23, 4  ;;  %s75_s6 = sshll.u32 %s3069_s25, 4  ;;  %s55_s24 = int_to_ptr.vmem [resolvable:$true] %s54_s24  ;;  %s76_s6 = int_to_ptr.vmem [resolvable:$true] %s75_s6 }
  0x5a   :  { %s2891_s26 = scalar_lea.hbm %s3374_s2, 384 }
  0x5b   :  { %p2892_p12 = scmp.ne.s32.totalorder %s3374_s2, %s2891_s26  ;;  %p2895_p13 = scmp.lt.u32.totalorder %s2891_s26, %s3374_s2 }
  0x5d   :  { %p2897_p0 = pnand %p2895_p13, %p2892_p12 }
  0x5f   :  { %2900 = shalt.err (!%p2897_p0)
}
  0x60   :  { %s2901_s0 = scalar_lea.vmem %s55_s24, 384  ;;  %p2906_p2 = scmp.lt.s32.totalorder %s55_s24, %s55_s24 }
  0x61   :  { %p2902_p1 = scmp.ne.s32.totalorder %s55_s24, %s2901_s0  ;;  %p2907_p3 = scmp.lt.s32.totalorder %s2901_s0, %s2901_s0 }
  0x63   :  { %p2908_p4 = por %p2907_p3, %p2906_p2 }
  0x65   :  { %p2909_p5 = pnand %p2908_p4, %p2902_p1 }
  0x67   :  { %2912 = shalt.err (!%p2909_p5)
}
  0x68   :  { %57 = dma.hbm_to_vmem [thread:$0]  %s3374_s2, 384, %s55_s24, [#allocation6]  }
  0x69   :  { %s2913_s9 = scalar_lea.hbm %s3376_s4, 2048 }
  0x6a   :  { %p2914_p6 = scmp.ne.s32.totalorder %s3376_s4, %s2913_s9  ;;  %p2917_p7 = scmp.lt.u32.totalorder %s2913_s9, %s3376_s4 }
  0x6c   :  { %p2919_p8 = pnand %p2917_p7, %p2914_p6 }
  0x6e   :  { %2922 = shalt.err (!%p2919_p8)
}
  0x6f   :  { %s2923_s21 = scalar_lea.vmem %s76_s6, 2048  ;;  %p2928_p10 = scmp.lt.s32.totalorder %s76_s6, %s76_s6 }
  0x70   :  { %p2924_p9 = scmp.ne.s32.totalorder %s76_s6, %s2923_s21  ;;  %p2929_p11 = scmp.lt.s32.totalorder %s2923_s21, %s2923_s21 }
  0x72   :  { %p2930_p12 = por %p2929_p11, %p2928_p10 }
  0x74   :  { %p2931_p13 = pnand %p2930_p12, %p2924_p9 }
  0x76   :  { %2934 = shalt.err (!%p2931_p13)
}
  0x77   :  { %81 = dma.hbm_to_vmem [thread:$0]  %s3376_s4, 2048, %s76_s6, [#allocation9], %s3390_s30, %s3390_s30, %s3062_s19  }
  0x78   :  { %s3070_s26 = smov [#allocation13]   ;;  %s3071_s27 = smov [#allocation16]  }
  0x79   :  { %s103_s1 = sshll.u32 %s3070_s26, 4  ;;  %s129_s28 = sshll.u32 %s3071_s27, 4  ;;  %s104_s1 = int_to_ptr.vmem [resolvable:$true] %s103_s1  ;;  %s130_s28 = int_to_ptr.vmem [resolvable:$true] %s129_s28 }
  0x7a   :  { %s2935_s17 = scalar_lea.hbm %s3380_s8, 6144 }
  0x7b   :  { %p2936_p0 = scmp.ne.s32.totalorder %s3380_s8, %s2935_s17  ;;  %p2939_p1 = scmp.lt.u32.totalorder %s2935_s17, %s3380_s8 }
  0x7d   :  { %p2941_p2 = pnand %p2939_p1, %p2936_p0 }
  0x7f   :  { %2944 = shalt.err (!%p2941_p2)
}
  0x80   :  { %s2945_s4 = scalar_lea.vmem %s104_s1, 6144  ;;  %p2950_p4 = scmp.lt.s32.totalorder %s104_s1, %s104_s1 }
  0x81   :  { %p2946_p3 = scmp.ne.s32.totalorder %s104_s1, %s2945_s4  ;;  %p2951_p5 = scmp.lt.s32.totalorder %s2945_s4, %s2945_s4 }
  0x83   :  { %p2952_p6 = por %p2951_p5, %p2950_p4 }
  0x85   :  { %p2953_p7 = pnand %p2952_p6, %p2946_p3 }
  0x87   :  { %2956 = shalt.err (!%p2953_p7)
}
  0x88   :  { %109 = dma.hbm_to_vmem [thread:$0]  %s3380_s8, 6144, %s104_s1, [#allocation12], %s3390_s30, %s3390_s30, %s3062_s19  }
  0x89   :  { %s2957_s3 = scalar_lea.hbm %s3383_s11, 4096 }
  0x8a   :  { %p2958_p8 = scmp.ne.s32.totalorder %s3383_s11, %s2957_s3  ;;  %p2961_p9 = scmp.lt.u32.totalorder %s2957_s3, %s3383_s11 }
  0x8c   :  { %p2963_p10 = pnand %p2961_p9, %p2958_p8 }
  0x8e   :  { %2966 = shalt.err (!%p2963_p10)
}
  0x8f   :  { %s2967_s27 = scalar_lea.vmem %s130_s28, 4096  ;;  %p2972_p12 = scmp.lt.s32.totalorder %s130_s28, %s130_s28 }
  0x90   :  { %p2968_p11 = scmp.ne.s32.totalorder %s130_s28, %s2967_s27  ;;  %p2973_p13 = scmp.lt.s32.totalorder %s2967_s27, %s2967_s27 }
  0x92   :  { %p2974_p0 = por %p2973_p13, %p2972_p12 }
  0x94   :  { %p2975_p1 = pnand %p2974_p0, %p2968_p11 }
  0x96   :  { %2978 = shalt.err (!%p2975_p1)
}
  0x97   :  { %135 = dma.hbm_to_vmem [thread:$0]  %s3383_s11, 4096, %s130_s28, [#allocation15], %s3390_s30, %s3390_s30, %s3062_s19  }
  0x98   :  { %3045 = dma.done.wait [#allocation3], 128  }
  0x99   :  { %3046 = vsyncadd [#allocation3], 4294967168 }
  0x9a   :  { %3047 = dma.done.wait [#allocation6], 448  }
  0x9b   :  { %3048 = vsyncadd [#allocation6], 4294966848 }
  0x9c   :  { %3049 = dma.done.wait [#allocation9], 6144  }
  0x9d   :  { %3050 = vsyncadd [#allocation9], 4294961152 }
  0x9e   :  { %3051 = dma.done.wait [#allocation12], 18432  }
  0x9f   :  { %3052 = vsyncadd [#allocation12], 4294948864 }
  0xa0   :  { %3053 = dma.done.wait [#allocation15], 6144  }
  0xa1   :  { %3054 = vsyncadd [#allocation15], 4294961152  ;;  %v3072_v0 = vmov 0   ;;  %v2405_v1 = vld [vmem:[#allocation8 + $0x4] ss:$8 sps:$4 sm:$0xff]   ;;  %v3287_v33 = vld [vmem:[#allocation2] sm:$0xff] }
  0xa2   :  { %328 = vmatprep.mubr.bf16.mxu0 %v3072_v0  ;;  %v2407_v2 = vld [vmem:[#allocation8] ss:$8 sps:$4 sm:$0xff]   ;;  %504 = vmatprep.subr.bf16.mxu1 %v2405_v1  ;;  %v2408_v3 = vld [vmem:[#allocation8 + $0x14] ss:$8 sps:$4 sm:$0xff]   ;;  %v2410_v4 = vld [vmem:[#allocation8 + $0x10] ss:$8 sps:$4 sm:$0xff]   ;;  %v2163_v35 = vcombine.high %v3287_v33, %v3287_v33 }
  0xa3   :  { %505 = vmatpush1.bf16.msra.mxu1 %v2407_v2  ;;  %v2411_v5 = vld [vmem:[#allocation8 + $0x24] ss:$8 sps:$4 sm:$0xff]   ;;  %v2413_v6 = vld [vmem:[#allocation8 + $0x20] ss:$8 sps:$4 sm:$0xff]   ;;  %v2414_v7 = vld [vmem:[#allocation8 + $0x34] ss:$8 sps:$4 sm:$0xff]   ;;  %v2162_v2 = vcombine.low %v3287_v33, %v3287_v33 }
  0xa4   :  { %506 = vmatprep.subr.bf16.mxu1 %v2408_v3  ;;  %v2416_v8 = vld [vmem:[#allocation8 + $0x30] ss:$8 sps:$4 sm:$0xff]   ;;  %v2428_v9 = vld [vmem:[#allocation10 + $0x4] ss:$8 sps:$4 sm:$0xff]   ;;  %v2431_v10 = vld [vmem:[#allocation10] ss:$8 sps:$4 sm:$0xff]   ;;  %536 = vmatprep.mubr.bf16.mxu1 %v2163_v35 }
  0xa5   :  { %v2417_v11 = vld [vmem:[#allocation8 + $0x44] ss:$8 sps:$4 sm:$0xff]   ;;  %296 = vmatprep.subr.bf16.mxu0 %v2428_v9  ;;  %v2434_v12 = vld [vmem:[#allocation10 + $0x14] ss:$8 sps:$4 sm:$0xff]   ;;  %v2437_v13 = vld [vmem:[#allocation10 + $0x10] ss:$8 sps:$4 sm:$0xff]  }
  0xa6   :  { %297 = vmatpush1.bf16.msra.mxu0 %v2431_v10  ;;  %v2419_v14 = vld [vmem:[#allocation8 + $0x40] ss:$8 sps:$4 sm:$0xff]   ;;  %v2420_v15 = vld [vmem:[#allocation8 + $0x54] ss:$8 sps:$4 sm:$0xff]   ;;  %v2440_v16 = vld [vmem:[#allocation10 + $0x24] ss:$8 sps:$4 sm:$0xff]  }
  0xa7   :  { %507 = vmatpush1.bf16.msra.mxu1 %v2410_v4  ;;  %298 = vmatprep.subr.bf16.mxu0 %v2434_v12  ;;  %v2443_v17 = vld [vmem:[#allocation10 + $0x20] ss:$8 sps:$4 sm:$0xff]   ;;  %v2422_v18 = vld [vmem:[#allocation8 + $0x50] ss:$8 sps:$4 sm:$0xff]   ;;  %v2446_v19 = vld [vmem:[#allocation10 + $0x34] ss:$8 sps:$4 sm:$0xff]  }
  0xa8   :  { %508 = vmatprep.subr.bf16.mxu1 %v2411_v5  ;;  %v2423_v20 = vld [vmem:[#allocation8 + $0x64] ss:$8 sps:$4 sm:$0xff]   ;;  %v2425_v21 = vld [vmem:[#allocation8 + $0x60] ss:$8 sps:$4 sm:$0xff]   ;;  %v2449_v22 = vld [vmem:[#allocation10 + $0x30] ss:$8 sps:$4 sm:$0xff]  }
  0xa9   :  { %v2452_v23 = vld [vmem:[#allocation10 + $0x44] ss:$8 sps:$4 sm:$0xff]   ;;  %v2426_v24 = vld [vmem:[#allocation8 + $0x74] ss:$8 sps:$4 sm:$0xff]   ;;  %v2455_v25 = vld [vmem:[#allocation10 + $0x40] ss:$8 sps:$4 sm:$0xff]  }
  0xaa   :  { %299 = vmatpush1.bf16.msra.mxu0 %v2437_v13  ;;  %v2430_v26 = vld [vmem:[#allocation8 + $0x70] ss:$8 sps:$4 sm:$0xff]   ;;  %v2458_v27 = vld [vmem:[#allocation10 + $0x54] ss:$8 sps:$4 sm:$0xff]   ;;  %v2432_v28 = vld [vmem:[#allocation8 + $0x84] ss:$8 sps:$4 sm:$0xff]  }
  0xab   :  { %509 = vmatpush1.bf16.msra.mxu1 %v2413_v6  ;;  %300 = vmatprep.subr.bf16.mxu0 %v2440_v16  ;;  %v2461_v29 = vld [vmem:[#allocation10 + $0x50] ss:$8 sps:$4 sm:$0xff]   ;;  %v2436_v30 = vld [vmem:[#allocation8 + $0x80] ss:$8 sps:$4 sm:$0xff]   ;;  %v2464_v31 = vld [vmem:[#allocation10 + $0x64] ss:$8 sps:$4 sm:$0xff]  }
  0xac   :  { %510 = vmatprep.subr.bf16.mxu1 %v2414_v7  ;;  %v2438_v32 = vld [vmem:[#allocation8 + $0x94] ss:$8 sps:$4 sm:$0xff]   ;;  %v2442_v34 = vld [vmem:[#allocation8 + $0x90] ss:$8 sps:$4 sm:$0xff]   ;;  %v2467_v36 = vld [vmem:[#allocation10 + $0x60] ss:$8 sps:$4 sm:$0xff]  }
  0xad   :  { %v2470_v37 = vld [vmem:[#allocation10 + $0x74] ss:$8 sps:$4 sm:$0xff]   ;;  %v2444_v38 = vld [vmem:[#allocation8 + $0xa4] ss:$8 sps:$4 sm:$0xff]   ;;  %v2448_v39 = vld [vmem:[#allocation8 + $0xa0] ss:$8 sps:$4 sm:$0xff]  }
  0xae   :  { %301 = vmatpush1.bf16.msra.mxu0 %v2443_v17  ;;  %v2473_v40 = vld [vmem:[#allocation10 + $0x70] ss:$8 sps:$4 sm:$0xff]   ;;  %v2481_v41 = vld [vmem:[#allocation11 + $0x4] ss:$24 sps:$4 sm:$0xff]   ;;  %v2487_v46 = vld [vmem:[#allocation11 + $0x34] ss:$24 sps:$4 sm:$0xff]  }
  0xaf   :  { %511 = vmatpush1.bf16.msra.mxu1 %v2416_v8  ;;  %302 = vmatprep.subr.bf16.mxu0 %v2446_v19  ;;  %v2450_v42 = vld [vmem:[#allocation8 + $0xb4] ss:$8 sps:$4 sm:$0xff]   ;;  %v2454_v43 = vld [vmem:[#allocation8 + $0xb0] ss:$8 sps:$4 sm:$0xff]   ;;  %v3291_v44 = vld [vmem:[#allocation5] sm:$0xf] }
  0xb0   :  { %512 = vmatprep.subr.bf16.mxu1 %v2417_v11  ;;  %v2479_v45 = vld [vmem:[#allocation11] ss:$24 sps:$4 sm:$0xff]   ;;  %v2456_v47 = vld [vmem:[#allocation8 + $0xc4] ss:$8 sps:$4 sm:$0xff]   ;;  %v2485_v49 = vld [vmem:[#allocation11 + $0x30] ss:$24 sps:$4 sm:$0xff]  }
  0xb1   :  { %v2460_v48 = vld [vmem:[#allocation8 + $0xc0] ss:$8 sps:$4 sm:$0xff]   ;;  %v2493_v50 = vld [vmem:[#allocation11 + $0x64] ss:$24 sps:$4 sm:$0xff]   ;;  %v2466_v52 = vld [vmem:[#allocation8 + $0xd0] ss:$8 sps:$4 sm:$0xff]  }
  0xb2   :  { %303 = vmatpush1.bf16.msra.mxu0 %v2449_v22  ;;  %v2462_v51 = vld [vmem:[#allocation8 + $0xd4] ss:$8 sps:$4 sm:$0xff]   ;;  %v2491_v53 = vld [vmem:[#allocation11 + $0x60] ss:$24 sps:$4 sm:$0xff]   ;;  %v2468_v55 = vld [vmem:[#allocation8 + $0xe4] ss:$8 sps:$4 sm:$0xff]  }
  0xb3   :  { %513 = vmatpush1.bf16.msra.mxu1 %v2419_v14  ;;  %304 = vmatprep.subr.bf16.mxu0 %v2452_v23  ;;  %v2499_v54 = vld [vmem:[#allocation11 + $0x94] ss:$24 sps:$4 sm:$0xff]   ;;  %v2472_v56 = vld [vmem:[#allocation8 + $0xe0] ss:$8 sps:$4 sm:$0xff]   ;;  %v2505_v58 = vld [vmem:[#allocation11 + $0xc4] ss:$24 sps:$4 sm:$0xff]  }
  0xb4   :  { %514 = vmatprep.subr.bf16.mxu1 %v2420_v15  ;;  %v2497_v57 = vld [vmem:[#allocation11 + $0x90] ss:$24 sps:$4 sm:$0xff]   ;;  %v2474_v59 = vld [vmem:[#allocation8 + $0xf4] ss:$8 sps:$4 sm:$0xff]   ;;  %v2503_v61 = vld [vmem:[#allocation11 + $0xc0] ss:$24 sps:$4 sm:$0xff]  }
  0xb5   :  { %v2476_v60 = vld [vmem:[#allocation8 + $0xf0] ss:$8 sps:$4 sm:$0xff]   ;;  %v2511_v62 = vld [vmem:[#allocation11 + $0xf4] ss:$24 sps:$4 sm:$0xff]   ;;  %v2482_v1 = vld [vmem:[#allocation11 + $0x8] ss:$24 sps:$4 sm:$0xff]  }
  0xb6   :  { %305 = vmatpush1.bf16.msra.mxu0 %v2455_v25  ;;  %v2484_v63 = vld [vmem:[#allocation11 + $0xc] ss:$24 sps:$4 sm:$0xff]   ;;  %v2509_v3 = vld [vmem:[#allocation11 + $0xf0] ss:$24 sps:$4 sm:$0xff]   ;;  %v2490_v5 = vld [vmem:[#allocation11 + $0x3c] ss:$24 sps:$4 sm:$0xff]  }
  0xb7   :  { %515 = vmatpush1.bf16.msra.mxu1 %v2422_v18  ;;  %306 = vmatprep.subr.bf16.mxu0 %v2458_v27  ;;  %v2517_v4 = vld [vmem:[#allocation11 + $0x124] ss:$24 sps:$4 sm:$0xff]   ;;  %v2488_v6 = vld [vmem:[#allocation11 + $0x38] ss:$24 sps:$4 sm:$0xff]   ;;  %v2523_v9 = vld [vmem:[#allocation11 + $0x154] ss:$24 sps:$4 sm:$0xff]  }
  0xb8   :  { %516 = vmatprep.subr.bf16.mxu1 %v2423_v20  ;;  %v2496_v7 = vld [vmem:[#allocation11 + $0x6c] ss:$24 sps:$4 sm:$0xff]   ;;  %v2515_v8 = vld [vmem:[#allocation11 + $0x120] ss:$24 sps:$4 sm:$0xff]   ;;  %v2521_v10 = vld [vmem:[#allocation11 + $0x150] ss:$24 sps:$4 sm:$0xff]  }
  0xb9   :  { %v2494_v11 = vld [vmem:[#allocation11 + $0x68] ss:$24 sps:$4 sm:$0xff]   ;;  %v2529_v12 = vld [vmem:[#allocation11 + $0x184] ss:$24 sps:$4 sm:$0xff]   ;;  %v2500_v15 = vld [vmem:[#allocation11 + $0x98] ss:$24 sps:$4 sm:$0xff]  }
  0xba   :  { %307 = vmatpush1.bf16.msra.mxu0 %v2461_v29  ;;  %v2502_v13 = vld [vmem:[#allocation11 + $0x9c] ss:$24 sps:$4 sm:$0xff]   ;;  %v2527_v14 = vld [vmem:[#allocation11 + $0x180] ss:$24 sps:$4 sm:$0xff]   ;;  %v2508_v17 = vld [vmem:[#allocation11 + $0xcc] ss:$24 sps:$4 sm:$0xff]  }
  0xbb   :  { %517 = vmatpush1.bf16.msra.mxu1 %v2425_v21  ;;  %308 = vmatprep.subr.bf16.mxu0 %v2464_v31  ;;  %v2535_v16 = vld [vmem:[#allocation11 + $0x1b4] ss:$24 sps:$4 sm:$0xff]   ;;  %v2533_v18 = vld [vmem:[#allocation11 + $0x1b0] ss:$24 sps:$4 sm:$0xff]   ;;  %v2541_v20 = vld [vmem:[#allocation11 + $0x1e4] ss:$24 sps:$4 sm:$0xff]  }
  0xbc   :  { %518 = vmatprep.subr.bf16.mxu1 %v2426_v24  ;;  %v2506_v19 = vld [vmem:[#allocation11 + $0xc8] ss:$24 sps:$4 sm:$0xff]   ;;  %v2514_v21 = vld [vmem:[#allocation11 + $0xfc] ss:$24 sps:$4 sm:$0xff]   ;;  %v2512_v23 = vld [vmem:[#allocation11 + $0xf8] ss:$24 sps:$4 sm:$0xff]  }
  0xbd   :  { %v2539_v22 = vld [vmem:[#allocation11 + $0x1e0] ss:$24 sps:$4 sm:$0xff]   ;;  %v2547_v24 = vld [vmem:[#allocation11 + $0x214] ss:$24 sps:$4 sm:$0xff]  }
  0xbe   :  { %309 = vmatpush1.bf16.msra.mxu0 %v2467_v36  ;;  %v2520_v25 = vld [vmem:[#allocation11 + $0x12c] ss:$24 sps:$4 sm:$0xff]   ;;  %v2518_v27 = vld [vmem:[#allocation11 + $0x128] ss:$24 sps:$4 sm:$0xff]   ;;  %v2526_v29 = vld [vmem:[#allocation11 + $0x15c] ss:$24 sps:$4 sm:$0xff]  }
  0xbf   :  { %519 = vmatpush1.bf16.msra.mxu1 %v2430_v26  ;;  %310 = vmatprep.subr.bf16.mxu0 %v2470_v37  ;;  %v2545_v26 = vld [vmem:[#allocation11 + $0x210] ss:$24 sps:$4 sm:$0xff]   ;;  %v2544_v36 = vld [vmem:[#allocation11 + $0x1ec] ss:$24 sps:$4 sm:$0xff]  }
  0xc0   :  { %520 = vmatprep.subr.bf16.mxu1 %v2432_v28  ;;  %v2553_v28 = vld [vmem:[#allocation11 + $0x244] ss:$24 sps:$4 sm:$0xff]   ;;  %v2524_v31 = vld [vmem:[#allocation11 + $0x158] ss:$24 sps:$4 sm:$0xff]   ;;  %v2530_v33 = vld [vmem:[#allocation11 + $0x188] ss:$24 sps:$4 sm:$0xff]  }
  0xc1   :  { %v2536_v35 = vld [vmem:[#allocation11 + $0x1b8] ss:$24 sps:$4 sm:$0xff]   ;;  %v2542_v37 = vld [vmem:[#allocation11 + $0x1e8] ss:$24 sps:$4 sm:$0xff]  }
  0xc2   :  { %311 = vmatpush1.bf16.msra.mxu0 %v2473_v40  ;;  %v2556_v40 = vld [vmem:[#allocation11 + $0x24c] ss:$24 sps:$4 sm:$0xff]  }
  0xc3   :  { %521 = vmatpush1.bf16.msra.mxu1 %v2436_v30  ;;  %1171 = vmatprep.subr.bf16.mxu0 %v2481_v41  ;;  %v2551_v30 = vld [vmem:[#allocation11 + $0x240] ss:$24 sps:$4 sm:$0xff]  }
  0xc4   :  { %522 = vmatprep.subr.bf16.mxu1 %v2438_v32  ;;  %v2532_v32 = vld [vmem:[#allocation11 + $0x18c] ss:$24 sps:$4 sm:$0xff]   ;;  %v2554_v41 = vld [vmem:[#allocation11 + $0x248] ss:$24 sps:$4 sm:$0xff]  }
  0xc5   :  { %329 = vmatmul.mubr.bf16.vlgmr.msra.gmra.mrb[0].mxu0 %v3291_v44 }
  0xc6   :  { %1172 = vmatpush1.bf16.msra.mxu0 %v2479_v45  ;;  %v2560_v45 = vld [vmem:[#allocation11 + $0x278] ss:$24 sps:$4 sm:$0xff]  }
  0xc7   :  { %523 = vmatpush1.bf16.msra.mxu1 %v2442_v34  ;;  %1173 = vmatprep.subr.bf16.mxu0 %v2487_v46  ;;  %v2538_v34 = vld [vmem:[#allocation11 + $0x1bc] ss:$24 sps:$4 sm:$0xff]  }
  0xc8   :  { %524 = vmatprep.subr.bf16.mxu1 %v2444_v38  ;;  %v2550_v38 = vld [vmem:[#allocation11 + $0x21c] ss:$24 sps:$4 sm:$0xff]  }
  0xc9   :  { %v2562_v46 = vld [vmem:[#allocation11 + $0x27c] ss:$24 sps:$4 sm:$0xff]  }
  0xca   :  { %1174 = vmatpush1.bf16.msra.mxu0 %v2485_v49  ;;  %v2568_v49 = vld [vmem:[#allocation11 + $0x2ac] ss:$24 sps:$4 sm:$0xff]  }
  0xcb   :  { %525 = vmatpush1.bf16.msra.mxu1 %v2448_v39  ;;  %1175 = vmatprep.subr.bf16.mxu0 %v2493_v50  ;;  %v2548_v39 = vld [vmem:[#allocation11 + $0x218] ss:$24 sps:$4 sm:$0xff]   ;;  %v2566_v50 = vld [vmem:[#allocation11 + $0x2a8] ss:$24 sps:$4 sm:$0xff]  }
  0xcc   :  { %526 = vmatprep.subr.bf16.mxu1 %v2450_v42  ;;  %v2557_v42 = vld [vmem:[#allocation11 + $0x270] ss:$24 sps:$4 sm:$0xff]  }
  0xce   :  { %1176 = vmatpush1.bf16.msra.mxu0 %v2491_v53  ;;  %v2574_v53 = vld [vmem:[#allocation11 + $0x2dc] ss:$24 sps:$4 sm:$0xff]  }
  0xcf   :  { %527 = vmatpush1.bf16.msra.mxu1 %v2454_v43  ;;  %1177 = vmatprep.subr.bf16.mxu0 %v2499_v54  ;;  %v2559_v43 = vld [vmem:[#allocation11 + $0x274] ss:$24 sps:$4 sm:$0xff]   ;;  %v2572_v54 = vld [vmem:[#allocation11 + $0x2d8] ss:$24 sps:$4 sm:$0xff]  }
  0xd0   :  { %528 = vmatprep.subr.bf16.mxu1 %v2456_v47  ;;  %v2565_v47 = vld [vmem:[#allocation11 + $0x2a4] ss:$24 sps:$4 sm:$0xff]  }
  0xd2   :  { %1178 = vmatpush1.bf16.msra.mxu0 %v2497_v57 }
  0xd3   :  { %529 = vmatpush1.bf16.msra.mxu1 %v2460_v48  ;;  %1179 = vmatprep.subr.bf16.mxu0 %v2505_v58  ;;  %v2563_v48 = vld [vmem:[#allocation11 + $0x2a0] ss:$24 sps:$4 sm:$0xff]  }
  0xd4   :  { %530 = vmatprep.subr.bf16.mxu1 %v2462_v51  ;;  %v2571_v51 = vld [vmem:[#allocation11 + $0x2d4] ss:$24 sps:$4 sm:$0xff]  }
  0xd6   :  { %1180 = vmatpush1.bf16.msra.mxu0 %v2503_v61 }
  0xd7   :  { %531 = vmatpush1.bf16.msra.mxu1 %v2466_v52  ;;  %1181 = vmatprep.subr.bf16.mxu0 %v2511_v62  ;;  %v2569_v52 = vld [vmem:[#allocation11 + $0x2d0] ss:$24 sps:$4 sm:$0xff]  }
  0xd8   :  { %532 = vmatprep.subr.bf16.mxu1 %v2468_v55  ;;  %v2577_v55 = vld [vmem:[#allocation11 + $0x14] ss:$24 sps:$4 sm:$0xff]  }
  0xda   :  { %1182 = vmatpush1.bf16.msra.mxu0 %v2509_v3 }
  0xdb   :  { %533 = vmatpush1.bf16.msra.mxu1 %v2472_v56  ;;  %1183 = vmatprep.subr.bf16.mxu0 %v2517_v4 }
  0xdc   :  { %534 = vmatprep.subr.bf16.mxu1 %v2474_v59 }
  0xde   :  { %1184 = vmatpush1.bf16.msra.mxu0 %v2515_v8 }
  0xdf   :  { %535 = vmatpush1.bf16.msra.mxu1 %v2476_v60  ;;  %1185 = vmatprep.subr.bf16.mxu0 %v2523_v9  ;;  %v547_v60 = vlaneseq }
  0xe0   :  { %1212 = vmatprep.subr.bf16.mxu1 %v2484_v63  ;;  %v545_v63 = vld [vmem:[%s3377_s5] sm:$0x3] }
  0xe1   :  { %v3296_v61 = vshrl.u32 %v547_v60, 7  ;;  %v2643_v60 = vld [vmem:[#allocation14 + $0x34] ss:$8 sps:$4 sm:$0xff]  }
  0xe2   :  { %537 = vmatmul.mubr.bf16.vlgmr.msra.gmra.mrb[0].mxu1 %v2162_v2  ;;  %1186 = vmatpush1.bf16.msra.mxu0 %v2521_v10 }
  0xe3   :  { %1213 = vmatpush1.bf16.msra.mxu1 %v2482_v1  ;;  %1187 = vmatprep.subr.bf16.mxu0 %v2529_v12  ;;  %v3299_v62 = vsub.s32 0, %v3296_v61  ;;  %v3305_v1 = vsub.s32 1, %v3296_v61 }
  0xe4   :  { %1214 = vmatprep.subr.bf16.mxu1 %v2490_v5 }
  0xe5   :  { %v550_v2 = vrot.slane %v545_v63, %v3299_v62  ;;  %v554_v4 = vrot.slane %v545_v63, %v3305_v1  ;;  %v2646_v63 = vld [vmem:[#allocation13 + $0x34] ss:$8 sps:$4 sm:$0xff]  }
  0xe6   :  { %1188 = vmatpush1.bf16.msra.mxu0 %v2527_v14 }
  0xe7   :  { %1215 = vmatpush1.bf16.msra.mxu1 %v2488_v6  ;;  %1189 = vmatprep.subr.bf16.mxu0 %v2535_v16 }
  0xe8   :  { %1216 = vmatprep.subr.bf16.mxu1 %v2496_v7 }
  0xea   :  { %1190 = vmatpush1.bf16.msra.mxu0 %v2533_v18  ;;  %v2578_v18 = vld [vmem:[#allocation11 + $0x40] ss:$24 sps:$4 sm:$0xff]  }
  0xeb   :  { %1217 = vmatpush1.bf16.msra.mxu1 %v2494_v11  ;;  %1191 = vmatprep.subr.bf16.mxu0 %v2541_v20  ;;  %v2581_v20 = vld [vmem:[#allocation11 + $0x70] ss:$24 sps:$4 sm:$0xff]  }
  0xec   :  { %1218 = vmatprep.subr.bf16.mxu1 %v2502_v13 }
  0xee   :  { %1192 = vmatpush1.bf16.msra.mxu0 %v2539_v22  ;;  %v2584_v22 = vld [vmem:[#allocation11 + $0xa0] ss:$24 sps:$4 sm:$0xff]  }
  0xef   :  { %1219 = vmatpush1.bf16.msra.mxu1 %v2500_v15  ;;  %1193 = vmatprep.subr.bf16.mxu0 %v2547_v24  ;;  %v2575_v15 = vld [vmem:[#allocation11 + $0x10] ss:$24 sps:$4 sm:$0xff]  }
  0xf0   :  { %1220 = vmatprep.subr.bf16.mxu1 %v2508_v17  ;;  %v2580_v17 = vld [vmem:[#allocation11 + $0x44] ss:$24 sps:$4 sm:$0xff]   ;;  %v2587_v24 = vld [vmem:[#allocation11 + $0xd0] ss:$24 sps:$4 sm:$0xff]  }
  0xf2   :  { %1194 = vmatpush1.bf16.msra.mxu0 %v2545_v26  ;;  %v2590_v26 = vld [vmem:[#allocation11 + $0x100] ss:$24 sps:$4 sm:$0xff]  }
  0xf3   :  { %1221 = vmatpush1.bf16.msra.mxu1 %v2506_v19  ;;  %1195 = vmatprep.subr.bf16.mxu0 %v2553_v28  ;;  %v2583_v19 = vld [vmem:[#allocation11 + $0x74] ss:$24 sps:$4 sm:$0xff]   ;;  %v2593_v28 = vld [vmem:[#allocation11 + $0x130] ss:$24 sps:$4 sm:$0xff]  }
  0xf4   :  { %1222 = vmatprep.subr.bf16.mxu1 %v2514_v21  ;;  %v2586_v21 = vld [vmem:[#allocation11 + $0xa4] ss:$24 sps:$4 sm:$0xff]  }
  0xf6   :  { %1196 = vmatpush1.bf16.msra.mxu0 %v2551_v30  ;;  %v2596_v30 = vld [vmem:[#allocation11 + $0x160] ss:$24 sps:$4 sm:$0xff]  }
  0xf7   :  { %1223 = vmatpush1.bf16.msra.mxu1 %v2512_v23  ;;  %1197 = vmatprep.subr.bf16.mxu0 %v2559_v43  ;;  %v2589_v23 = vld [vmem:[#allocation11 + $0xd4] ss:$24 sps:$4 sm:$0xff]  }
  0xf8   :  { %1224 = vmatprep.subr.bf16.mxu1 %v2520_v25  ;;  %v2592_v25 = vld [vmem:[#allocation11 + $0x104] ss:$24 sps:$4 sm:$0xff]   ;;  %v2619_v43 = vld [vmem:[#allocation11 + $0x2b4] ss:$24 sps:$4 sm:$0xff]  }
  0xfa   :  { %1198 = vmatpush1.bf16.msra.mxu0 %v2557_v42  ;;  %v2614_v42 = vld [vmem:[#allocation11 + $0x280] ss:$24 sps:$4 sm:$0xff]  }
  0xfb   :  { %1225 = vmatpush1.bf16.msra.mxu1 %v2518_v27  ;;  %1199 = vmatprep.subr.bf16.mxu0 %v2565_v47  ;;  %v2595_v27 = vld [vmem:[#allocation11 + $0x134] ss:$24 sps:$4 sm:$0xff]   ;;  %v2620_v47 = vld [vmem:[#allocation11 + $0x2e0] ss:$24 sps:$4 sm:$0xff]  }
  0xfc   :  { %1226 = vmatprep.subr.bf16.mxu1 %v2526_v29  ;;  %v2598_v29 = vld [vmem:[#allocation11 + $0x164] ss:$24 sps:$4 sm:$0xff]  }
  0xfe   :  { %1200 = vmatpush1.bf16.msra.mxu0 %v2563_v48  ;;  %v2623_v48 = vld [vmem:[#allocation14] ss:$8 sps:$4 sm:$0xff]  }
  0xff   :  { %1227 = vmatpush1.bf16.msra.mxu1 %v2524_v31  ;;  %1201 = vmatprep.subr.bf16.mxu0 %v2571_v51  ;;  %v2601_v31 = vld [vmem:[#allocation11 + $0x194] ss:$24 sps:$4 sm:$0xff]  }
 0x100   :  { %1228 = vmatprep.subr.bf16.mxu1 %v2532_v32  ;;  %v2599_v32 = vld [vmem:[#allocation11 + $0x190] ss:$24 sps:$4 sm:$0xff]   ;;  %v2628_v51 = vld [vmem:[#allocation13 + $0x4] ss:$8 sps:$4 sm:$0xff]  }
 0x102   :  { %1202 = vmatpush1.bf16.msra.mxu0 %v2569_v52  ;;  %v2631_v52 = vld [vmem:[#allocation14 + $0x14] ss:$8 sps:$4 sm:$0xff]  }
 0x103   :  { %1229 = vmatpush1.bf16.msra.mxu1 %v2530_v33  ;;  %1253 = vmatprep.subr.bf16.mxu0 %v2577_v55  ;;  %v2604_v33 = vld [vmem:[#allocation11 + $0x1c4] ss:$24 sps:$4 sm:$0xff]   ;;  %v2632_v55 = vld [vmem:[#allocation13 + $0x10] ss:$8 sps:$4 sm:$0xff]  }
 0x104   :  { %1230 = vmatprep.subr.bf16.mxu1 %v2538_v34  ;;  %v2602_v34 = vld [vmem:[#allocation11 + $0x1c0] ss:$24 sps:$4 sm:$0xff]  }
 0x107   :  { %1231 = vmatpush1.bf16.msra.mxu1 %v2536_v35  ;;  %v2607_v35 = vld [vmem:[#allocation11 + $0x1f4] ss:$24 sps:$4 sm:$0xff]  }
 0x108   :  { %1232 = vmatprep.subr.bf16.mxu1 %v2544_v36  ;;  %v2605_v36 = vld [vmem:[#allocation11 + $0x1f0] ss:$24 sps:$4 sm:$0xff]  }
 0x10b   :  { %1233 = vmatpush1.bf16.msra.mxu1 %v2542_v37  ;;  %v2610_v37 = vld [vmem:[#allocation11 + $0x224] ss:$24 sps:$4 sm:$0xff]  }
 0x10c   :  { %1234 = vmatprep.subr.bf16.mxu1 %v2550_v38  ;;  %v2608_v38 = vld [vmem:[#allocation11 + $0x220] ss:$24 sps:$4 sm:$0xff]  }
 0x10f   :  { %1235 = vmatpush1.bf16.msra.mxu1 %v2548_v39  ;;  %v2613_v39 = vld [vmem:[#allocation11 + $0x254] ss:$24 sps:$4 sm:$0xff]  }
 0x110   :  { %1236 = vmatprep.subr.bf16.mxu1 %v2556_v40  ;;  %v2611_v40 = vld [vmem:[#allocation11 + $0x250] ss:$24 sps:$4 sm:$0xff]  }
 0x113   :  { %1237 = vmatpush1.bf16.msra.mxu1 %v2554_v41  ;;  %v2616_v41 = vld [vmem:[#allocation11 + $0x284] ss:$24 sps:$4 sm:$0xff]  }
 0x114   :  { %1238 = vmatprep.subr.bf16.mxu1 %v2562_v46  ;;  %v2622_v46 = vld [vmem:[#allocation11 + $0x2e4] ss:$24 sps:$4 sm:$0xff]  }
 0x117   :  { %1239 = vmatpush1.bf16.msra.mxu1 %v2560_v45  ;;  %v2617_v45 = vld [vmem:[#allocation11 + $0x2b0] ss:$24 sps:$4 sm:$0xff]  }
 0x118   :  { %1240 = vmatprep.subr.bf16.mxu1 %v2568_v49  ;;  %v2625_v49 = vld [vmem:[#allocation14 + $0x4] ss:$8 sps:$4 sm:$0xff]  }
 0x11b   :  { %1241 = vmatpush1.bf16.msra.mxu1 %v2566_v50  ;;  %v2626_v50 = vld [vmem:[#allocation13] ss:$8 sps:$4 sm:$0xff]  }
 0x11c   :  { %1242 = vmatprep.subr.bf16.mxu1 %v2574_v53  ;;  %v2634_v53 = vld [vmem:[#allocation13 + $0x14] ss:$8 sps:$4 sm:$0xff]  }
 0x11f   :  { %1243 = vmatpush1.bf16.msra.mxu1 %v2572_v54  ;;  %v2629_v54 = vld [vmem:[#allocation14 + $0x10] ss:$8 sps:$4 sm:$0xff]  }
 0x120   :  { %1456 = vmatprep.subr.bf16.mxu1 %v2625_v49  ;;  %v2713_v49 = vld [vmem:[#allocation13 + $0xf0] ss:$8 sps:$4 sm:$0xff]  }
 0x198   :  { %v330_v56 = vpop.f32.mrb[0].mxu0 }
 0x199   :  { %v332_v57 = vpop.f32.mrb[1].mxu0 }
 0x19a   :  { %v334_v58 = vpop.f32.mrb[2].mxu0 }
 0x19b   :  { %v335_v59 = vpop.f32.mrb[3].mxu0  ;;  %v2635_v58 = vld [vmem:[#allocation14 + $0x20] ss:$8 sps:$4 sm:$0xff]  }
 0x19c   :  { %v2638_v59 = vld [vmem:[#allocation13 + $0x20] ss:$8 sps:$4 sm:$0xff]  }
 0x1b5   :  { %v538_v3 = vpop.f32.mrb[0].mxu1 }
 0x1b6   :  { %v539_v5 = vadd.f32 %v538_v3, %v330_v56  ;;  %v540_v6 = vpop.f32.mrb[1].mxu1  ;;  %v2637_v56 = vld [vmem:[#allocation14 + $0x24] ss:$8 sps:$4 sm:$0xff]   ;;  %v2644_v3 = vld [vmem:[#allocation13 + $0x30] ss:$8 sps:$4 sm:$0xff]  }
 0x1b7   :  { %v541_v7 = vadd.f32 %v540_v6, %v332_v57  ;;  %v542_v8 = vpop.f32.mrb[2].mxu1  ;;  %v2640_v57 = vld [vmem:[#allocation13 + $0x24] ss:$8 sps:$4 sm:$0xff]   ;;  %v2647_v6 = vld [vmem:[#allocation14 + $0x40] ss:$8 sps:$4 sm:$0xff]  }
 0x1b8   :  { %v557_v9 = vadd.f32 %v550_v2, %v539_v5  ;;  %v543_v10 = vpop.f32.mrb[3].mxu1  ;;  %v2641_v2 = vld [vmem:[#allocation14 + $0x30] ss:$8 sps:$4 sm:$0xff]   ;;  %v2652_v5 = vld [vmem:[#allocation13 + $0x44] ss:$8 sps:$4 sm:$0xff]  }
 0x1b9   :  { %v558_v11 = vadd.f32 %v554_v4, %v541_v7  ;;  %v2649_v4 = vld [vmem:[#allocation14 + $0x44] ss:$8 sps:$4 sm:$0xff]   ;;  %v2650_v7 = vld [vmem:[#allocation13 + $0x40] ss:$8 sps:$4 sm:$0xff]   ;;  %v2655_v8 = vld [vmem:[#allocation14 + $0x54] ss:$8 sps:$4 sm:$0xff]  }
 0x1ba   :  { %v559_v12 = vmax.f32 %v557_v9, 0.0  ;;  %v2658_v9 = vld [vmem:[#allocation13 + $0x54] ss:$8 sps:$4 sm:$0xff]   ;;  %v2653_v10 = vld [vmem:[#allocation14 + $0x50] ss:$8 sps:$4 sm:$0xff]  }
 0x1bb   :  { %v560_v13 = vmax.f32 %v558_v11, 0.0  ;;  %v2656_v11 = vld [vmem:[#allocation13 + $0x50] ss:$8 sps:$4 sm:$0xff]  }
 0x1bc   :  { %v3309_v16 = vpack.c.bf16 %v559_v12, %v559_v12  ;;  %v2661_v12 = vld [vmem:[#allocation14 + $0x64] ss:$8 sps:$4 sm:$0xff]  }
 0x1bd   :  { %v562_v14 = vpack.c.bf16 %v560_v13, %v560_v13  ;;  %v2664_v13 = vld [vmem:[#allocation13 + $0x64] ss:$8 sps:$4 sm:$0xff]  }
 0x1bf   :  { %1203 = vmatprep.mubr.bf16.mxu0 %v562_v14  ;;  %1244 = vmatprep.mubr.bf16.mxu1 %v562_v14 }
 0x1c0   :  { %1204 = vmatmul.mubr.bf16.vlgmr.msra.gmra.mrb[4].mxu0 %v3309_v16  ;;  %1245 = vmatmul.mubr.bf16.vlgmr.msra.gmra.mrb[4].mxu1 %v3309_v16 }
 0x1c1   :  { %1254 = vmatpush1.bf16.msra.mxu0 %v2575_v15  ;;  %1285 = vmatprep.mubr.bf16.mxu0 %v562_v14  ;;  %v2659_v14 = vld [vmem:[#allocation14 + $0x60] ss:$8 sps:$4 sm:$0xff]  }
 0x1c2   :  { %1255 = vmatprep.subr.bf16.mxu0 %v2580_v17  ;;  %1488 = vmatprep.mubr.bf16.mxu1 %v3072_v0  ;;  %v2662_v15 = vld [vmem:[#allocation13 + $0x60] ss:$8 sps:$4 sm:$0xff]   ;;  %v2670_v17 = vld [vmem:[#allocation13 + $0x74] ss:$8 sps:$4 sm:$0xff]  }
 0x1c3   :  { %1457 = vmatpush1.bf16.msra.mxu1 %v2623_v48  ;;  %v2718_v48 = vld [vmem:[#allocation13 + $0x174] ss:$8 sps:$4 sm:$0xff]  }
 0x1c4   :  { %1458 = vmatprep.subr.bf16.mxu1 %v2631_v52  ;;  %v671_v52 = vsub.s32 2, %v3296_v61 }
 0x1c5   :  { %1256 = vmatpush1.bf16.msra.mxu0 %v2578_v18  ;;  %v2665_v18 = vld [vmem:[#allocation14 + $0x70] ss:$8 sps:$4 sm:$0xff]  }
 0x1c6   :  { %1257 = vmatprep.subr.bf16.mxu0 %v2583_v19  ;;  %v2668_v19 = vld [vmem:[#allocation13 + $0x70] ss:$8 sps:$4 sm:$0xff]  }
 0x1c7   :  { %1459 = vmatpush1.bf16.msra.mxu1 %v2629_v54  ;;  %v675_v54 = vsub.s32 3, %v3296_v61 }
 0x1c8   :  { %1460 = vmatprep.subr.bf16.mxu1 %v2637_v56 }
 0x1c9   :  { %1258 = vmatpush1.bf16.msra.mxu0 %v2581_v20  ;;  %v2676_v20 = vld [vmem:[#allocation13 + $0x104] ss:$8 sps:$4 sm:$0xff]  }
 0x1ca   :  { %1259 = vmatprep.subr.bf16.mxu0 %v2586_v21  ;;  %v2673_v21 = vld [vmem:[#allocation13 + $0x84] ss:$8 sps:$4 sm:$0xff]  }
 0x1cb   :  { %1461 = vmatpush1.bf16.msra.mxu1 %v2635_v58 }
 0x1cc   :  { %1462 = vmatprep.subr.bf16.mxu1 %v2643_v60 }
 0x1cd   :  { %1260 = vmatpush1.bf16.msra.mxu0 %v2584_v22  ;;  %v2674_v22 = vld [vmem:[#allocation13 + $0x100] ss:$8 sps:$4 sm:$0xff]  }
 0x1ce   :  { %1261 = vmatprep.subr.bf16.mxu0 %v2589_v23  ;;  %v2671_v23 = vld [vmem:[#allocation13 + $0x80] ss:$8 sps:$4 sm:$0xff]  }
 0x1cf   :  { %1463 = vmatpush1.bf16.msra.mxu1 %v2641_v2 }
 0x1d0   :  { %1464 = vmatprep.subr.bf16.mxu1 %v2649_v4 }
 0x1d1   :  { %1262 = vmatpush1.bf16.msra.mxu0 %v2587_v24  ;;  %v2682_v24 = vld [vmem:[#allocation13 + $0x114] ss:$8 sps:$4 sm:$0xff]  }
 0x1d2   :  { %1263 = vmatprep.subr.bf16.mxu0 %v2592_v25  ;;  %v2679_v25 = vld [vmem:[#allocation13 + $0x94] ss:$8 sps:$4 sm:$0xff]  }
 0x1d3   :  { %1465 = vmatpush1.bf16.msra.mxu1 %v2647_v6 }
 0x1d4   :  { %1466 = vmatprep.subr.bf16.mxu1 %v2655_v8 }
 0x1d5   :  { %1264 = vmatpush1.bf16.msra.mxu0 %v2590_v26  ;;  %v2680_v26 = vld [vmem:[#allocation13 + $0x110] ss:$8 sps:$4 sm:$0xff]  }
 0x1d6   :  { %1265 = vmatprep.subr.bf16.mxu0 %v2595_v27  ;;  %v2677_v27 = vld [vmem:[#allocation13 + $0x90] ss:$8 sps:$4 sm:$0xff]  }
 0x1d7   :  { %1467 = vmatpush1.bf16.msra.mxu1 %v2653_v10 }
 0x1d8   :  { %1468 = vmatprep.subr.bf16.mxu1 %v2661_v12  ;;  %v1294_v12 = vld [vmem:[#allocation7] sm:$0xff] }
 0x1d9   :  { %1266 = vmatpush1.bf16.msra.mxu0 %v2593_v28  ;;  %v2688_v28 = vld [vmem:[#allocation13 + $0x124] ss:$8 sps:$4 sm:$0xff]  }
 0x1da   :  { %1267 = vmatprep.subr.bf16.mxu0 %v2598_v29  ;;  %v2685_v29 = vld [vmem:[#allocation13 + $0xa4] ss:$8 sps:$4 sm:$0xff]  }
 0x1db   :  { %1469 = vmatpush1.bf16.msra.mxu1 %v2659_v14 }
 0x1dd   :  { %1268 = vmatpush1.bf16.msra.mxu0 %v2596_v30  ;;  %v2686_v30 = vld [vmem:[#allocation13 + $0x120] ss:$8 sps:$4 sm:$0xff]  }
 0x1de   :  { %1269 = vmatprep.subr.bf16.mxu0 %v2601_v31  ;;  %v2683_v31 = vld [vmem:[#allocation13 + $0xa0] ss:$8 sps:$4 sm:$0xff]  }
 0x1e1   :  { %1270 = vmatpush1.bf16.msra.mxu0 %v2599_v32  ;;  %v2691_v32 = vld [vmem:[#allocation13 + $0xb4] ss:$8 sps:$4 sm:$0xff]  }
 0x1e2   :  { %1271 = vmatprep.subr.bf16.mxu0 %v2604_v33  ;;  %v2689_v33 = vld [vmem:[#allocation13 + $0xb0] ss:$8 sps:$4 sm:$0xff]  }
 0x1e5   :  { %1272 = vmatpush1.bf16.msra.mxu0 %v2602_v34  ;;  %v2692_v34 = vld [vmem:[#allocation13 + $0x130] ss:$8 sps:$4 sm:$0xff]  }
 0x1e6   :  { %1273 = vmatprep.subr.bf16.mxu0 %v2607_v35  ;;  %v2700_v35 = vld [vmem:[#allocation13 + $0x144] ss:$8 sps:$4 sm:$0xff]  }
 0x1e9   :  { %1274 = vmatpush1.bf16.msra.mxu0 %v2605_v36  ;;  %v2695_v36 = vld [vmem:[#allocation13 + $0xc0] ss:$8 sps:$4 sm:$0xff]  }
 0x1ea   :  { %1275 = vmatprep.subr.bf16.mxu0 %v2610_v37  ;;  %v2698_v37 = vld [vmem:[#allocation13 + $0x140] ss:$8 sps:$4 sm:$0xff]  }
 0x1ed   :  { %1276 = vmatpush1.bf16.msra.mxu0 %v2608_v38  ;;  %v2703_v38 = vld [vmem:[#allocation13 + $0xd4] ss:$8 sps:$4 sm:$0xff]  }
 0x1ee   :  { %1277 = vmatprep.subr.bf16.mxu0 %v2613_v39  ;;  %v2706_v39 = vld [vmem:[#allocation13 + $0x154] ss:$8 sps:$4 sm:$0xff]  }
 0x1f1   :  { %1278 = vmatpush1.bf16.msra.mxu0 %v2611_v40  ;;  %v2701_v40 = vld [vmem:[#allocation13 + $0xd0] ss:$8 sps:$4 sm:$0xff]  }
 0x1f2   :  { %1279 = vmatprep.subr.bf16.mxu0 %v2616_v41  ;;  %v2704_v41 = vld [vmem:[#allocation13 + $0x150] ss:$8 sps:$4 sm:$0xff]  }
 0x1f5   :  { %1280 = vmatpush1.bf16.msra.mxu0 %v2614_v42  ;;  %v2709_v42 = vld [vmem:[#allocation13 + $0xe4] ss:$8 sps:$4 sm:$0xff]  }
 0x1f6   :  { %1281 = vmatprep.subr.bf16.mxu0 %v2619_v43  ;;  %v2712_v43 = vld [vmem:[#allocation13 + $0x164] ss:$8 sps:$4 sm:$0xff]  }
 0x1f9   :  { %1282 = vmatpush1.bf16.msra.mxu0 %v2617_v45  ;;  %v2707_v45 = vld [vmem:[#allocation13 + $0xe0] ss:$8 sps:$4 sm:$0xff]  }
 0x1fa   :  { %1283 = vmatprep.subr.bf16.mxu0 %v2622_v46  ;;  %v2710_v46 = vld [vmem:[#allocation13 + $0x160] ss:$8 sps:$4 sm:$0xff]  }
 0x1fd   :  { %1284 = vmatpush1.bf16.msra.mxu0 %v2620_v47  ;;  %v2715_v47 = vld [vmem:[#allocation13 + $0xf4] ss:$8 sps:$4 sm:$0xff]  }
 0x1fe   :  { %1737 = vmatprep.subr.bf16.mxu0 %v2628_v51  ;;  %v2721_v51 = vld [vmem:[#allocation16 + $0x4] ss:$8 sps:$4 sm:$0xff]  }
 0x200   :  { %1286 = vmatmul.mubr.bf16.vlgmr.msra.gmra.mrb[8].mxu0 %v3309_v16  ;;  %v2667_v16 = vld [vmem:[#allocation14 + $0x74] ss:$8 sps:$4 sm:$0xff]  }
 0x201   :  { %1738 = vmatpush1.bf16.msra.mxu0 %v2626_v50  ;;  %1470 = vmatprep.subr.bf16.mxu1 %v2667_v16  ;;  %v2716_v50 = vld [vmem:[#allocation13 + $0x170] ss:$8 sps:$4 sm:$0xff]   ;;  %v679_v16 = vsub.s32 4, %v3296_v61 }
 0x202   :  { %1739 = vmatprep.subr.bf16.mxu0 %v2634_v53  ;;  %1471 = vmatpush1.bf16.msra.mxu1 %v2665_v18  ;;  %v659_v53 = vld [vmem:[%s3379_s7] sm:$0x3f] }
 0x203   :  { %1778 = vmatprep.subr.bf16.mxu1 %v2676_v20  ;;  %v672_v56 = vrot.slane %v659_v53, %v671_v52  ;;  %v676_v58 = vrot.slane %v659_v53, %v675_v54  ;;  %v680_v18 = vrot.slane %v659_v53, %v679_v16  ;;  %v2745_v52 = vld [vmem:[#allocation16 + $0x84] ss:$8 sps:$4 sm:$0xff]   ;;  %v2748_v54 = vld [vmem:[#allocation16 + $0x94] ss:$8 sps:$4 sm:$0xff]  }
 0x205   :  { %1740 = vmatpush1.bf16.msra.mxu0 %v2632_v55  ;;  %1489 = vmatmul.mubr.bf16.vlgmr.msra.gmra.mrb[8].mxu1 %v3291_v44  ;;  %v2694_v44 = vld [vmem:[#allocation13 + $0x134] ss:$8 sps:$4 sm:$0xff]   ;;  %v664_v55 = vrot.slane %v659_v53, %v3299_v62 }
 0x206   :  { %1741 = vmatprep.subr.bf16.mxu0 %v2640_v57  ;;  %1779 = vmatpush1.bf16.msra.mxu1 %v2674_v22  ;;  %v668_v57 = vrot.slane %v659_v53, %v3305_v1 }
 0x207   :  { %1810 = vmatprep.mubr.bf16.mxu1 %v3072_v0  ;;  %1780 = vmatprep.subr.bf16.mxu1 %v2682_v24  ;;  %v2697_v0 = vld [vmem:[#allocation13 + $0xc4] ss:$8 sps:$4 sm:$0xff]  }
 0x209   :  { %1742 = vmatpush1.bf16.msra.mxu0 %v2638_v59 }
 0x20a   :  { %1743 = vmatprep.subr.bf16.mxu0 %v2646_v63  ;;  %1781 = vmatpush1.bf16.msra.mxu1 %v2680_v26 }
 0x20b   :  { %1782 = vmatprep.subr.bf16.mxu1 %v2688_v28  ;;  %v1295_v28 = vld [vmem:[#allocation7 + $0x8] sm:$0xff] }
 0x20d   :  { %1744 = vmatpush1.bf16.msra.mxu0 %v2644_v3 }
 0x20e   :  { %1745 = vmatprep.subr.bf16.mxu0 %v2652_v5  ;;  %1783 = vmatpush1.bf16.msra.mxu1 %v2686_v30 }
 0x20f   :  { %1784 = vmatprep.subr.bf16.mxu1 %v2694_v44 }
 0x211   :  { %1746 = vmatpush1.bf16.msra.mxu0 %v2650_v7 }
 0x212   :  { %1747 = vmatprep.subr.bf16.mxu0 %v2658_v9  ;;  %1785 = vmatpush1.bf16.msra.mxu1 %v2692_v34 }
 0x213   :  { %1786 = vmatprep.subr.bf16.mxu1 %v2700_v35 }
 0x215   :  { %1748 = vmatpush1.bf16.msra.mxu0 %v2656_v11 }
 0x216   :  { %1749 = vmatprep.subr.bf16.mxu0 %v2664_v13  ;;  %1787 = vmatpush1.bf16.msra.mxu1 %v2698_v37  ;;  %v2724_v37 = vld [vmem:[#allocation16 + $0x14] ss:$8 sps:$4 sm:$0xff]  }
 0x217   :  { %1788 = vmatprep.subr.bf16.mxu1 %v2706_v39  ;;  %v2727_v39 = vld [vmem:[#allocation16 + $0x24] ss:$8 sps:$4 sm:$0xff]  }
 0x219   :  { %1750 = vmatpush1.bf16.msra.mxu0 %v2662_v15 }
 0x21a   :  { %1751 = vmatprep.subr.bf16.mxu0 %v2670_v17  ;;  %1789 = vmatpush1.bf16.msra.mxu1 %v2704_v41  ;;  %v683_v17 = vsub.s32 5, %v3296_v61  ;;  %v2730_v41 = vld [vmem:[#allocation16 + $0x34] ss:$8 sps:$4 sm:$0xff]  }
 0x21b   :  { %1790 = vmatprep.subr.bf16.mxu1 %v2712_v43  ;;  %v2733_v43 = vld [vmem:[#allocation16 + $0x44] ss:$8 sps:$4 sm:$0xff]  }
 0x21d   :  { %1752 = vmatpush1.bf16.msra.mxu0 %v2668_v19  ;;  %v684_v19 = vrot.slane %v659_v53, %v683_v17  ;;  %v2743_v53 = vld [vmem:[#allocation16 + $0x80] ss:$8 sps:$4 sm:$0xff]  }
 0x21e   :  { %1753 = vmatprep.subr.bf16.mxu0 %v2673_v21  ;;  %1791 = vmatpush1.bf16.msra.mxu1 %v2710_v46  ;;  %v2736_v46 = vld [vmem:[#allocation16 + $0x54] ss:$8 sps:$4 sm:$0xff]  }
 0x21f   :  { %1792 = vmatprep.subr.bf16.mxu1 %v2718_v48  ;;  %v2739_v48 = vld [vmem:[#allocation16 + $0x64] ss:$8 sps:$4 sm:$0xff]  }
 0x221   :  { %1754 = vmatpush1.bf16.msra.mxu0 %v2671_v23 }
 0x222   :  { %1755 = vmatprep.subr.bf16.mxu0 %v2679_v25  ;;  %1793 = vmatpush1.bf16.msra.mxu1 %v2716_v50  ;;  %v2742_v50 = vld [vmem:[#allocation16 + $0x74] ss:$8 sps:$4 sm:$0xff]  }
 0x223   :  { %2041 = vmatprep.subr.bf16.mxu1 %v2721_v51  ;;  %v2740_v51 = vld [vmem:[#allocation16 + $0x70] ss:$8 sps:$4 sm:$0xff]  }
 0x225   :  { %1756 = vmatpush1.bf16.msra.mxu0 %v2677_v27 }
 0x226   :  { %1757 = vmatprep.subr.bf16.mxu0 %v2685_v29  ;;  %v1296_v29 = vld [vmem:[#allocation7 + $0x10] sm:$0xff] }
 0x229   :  { %1758 = vmatpush1.bf16.msra.mxu0 %v2683_v31 }
 0x22a   :  { %1759 = vmatprep.subr.bf16.mxu0 %v2691_v32 }
 0x22d   :  { %1760 = vmatpush1.bf16.msra.mxu0 %v2689_v33 }
 0x22e   :  { %1761 = vmatprep.subr.bf16.mxu0 %v2697_v0  ;;  %v2719_v0 = vld [vmem:[#allocation16] ss:$8 sps:$4 sm:$0xff]  }
 0x231   :  { %1762 = vmatpush1.bf16.msra.mxu0 %v2695_v36 }
 0x232   :  { %1763 = vmatprep.subr.bf16.mxu0 %v2703_v38  ;;  %v2722_v38 = vld [vmem:[#allocation16 + $0x10] ss:$8 sps:$4 sm:$0xff]  }
 0x235   :  { %1764 = vmatpush1.bf16.msra.mxu0 %v2701_v40  ;;  %v2725_v40 = vld [vmem:[#allocation16 + $0x20] ss:$8 sps:$4 sm:$0xff]  }
 0x236   :  { %1765 = vmatprep.subr.bf16.mxu0 %v2709_v42  ;;  %v2728_v42 = vld [vmem:[#allocation16 + $0x30] ss:$8 sps:$4 sm:$0xff]  }
 0x239   :  { %1766 = vmatpush1.bf16.msra.mxu0 %v2707_v45  ;;  %v2731_v45 = vld [vmem:[#allocation16 + $0x40] ss:$8 sps:$4 sm:$0xff]  }
 0x23a   :  { %1767 = vmatprep.subr.bf16.mxu0 %v2715_v47  ;;  %v2734_v47 = vld [vmem:[#allocation16 + $0x50] ss:$8 sps:$4 sm:$0xff]  }
 0x23d   :  { %1768 = vmatpush1.bf16.msra.mxu0 %v2713_v49  ;;  %v2737_v49 = vld [vmem:[#allocation16 + $0x60] ss:$8 sps:$4 sm:$0xff]  }
 0x293   :  { %v1205_v59 = vpop.f32.mrb[4].mxu0  ;;  %v1246_v60 = vpop.f32.mrb[4].mxu1 }
 0x294   :  { %v1206_v63 = vadd.f32 %v1205_v59, %v664_v55  ;;  %v1247_v2 = vadd.f32 %v1246_v60, %v672_v56  ;;  %v1207_v3 = vpop.f32.mrb[5].mxu0  ;;  %v1248_v4 = vpop.f32.mrb[5].mxu1  ;;  %v2746_v55 = vld [vmem:[#allocation16 + $0x90] ss:$8 sps:$4 sm:$0xff]   ;;  %v2751_v56 = vld [vmem:[#allocation16 + $0xa4] ss:$8 sps:$4 sm:$0xff]  }
 0x295   :  { %v1208_v5 = vadd.f32 %v1207_v3, %v668_v57  ;;  %v1249_v6 = vadd.f32 %v1248_v4, %v676_v58  ;;  %v1209_v7 = vpop.f32.mrb[6].mxu0  ;;  %v1250_v8 = vpop.f32.mrb[6].mxu1  ;;  %v2749_v59 = vld [vmem:[#allocation16 + $0xa0] ss:$8 sps:$4 sm:$0xff]   ;;  %v2752_v3 = vld [vmem:[#allocation16 + $0xb0] ss:$8 sps:$4 sm:$0xff]  }
 0x296   :  { %2094 = vst [vmem:[#allocation18] sm:$0xff] %v1206_v63  ;;  %2096 = vst [vmem:[#allocation18 + $0x10] sm:$0xff] %v1247_v2  ;;  %v1210_v9 = vpop.f32.mrb[7].mxu0  ;;  %v1251_v10 = vpop.f32.mrb[7].mxu1  ;;  %v2757_v4 = vld [vmem:[#allocation16 + $0xc4] ss:$8 sps:$4 sm:$0xff]  }
 0x297   :  { %2095 = vst [vmem:[#allocation18 + $0x8] sm:$0xff] %v1208_v5  ;;  %v1297_v11 = vmul.f32 1.442695, %v1249_v6  ;;  %2097 = vst [vmem:[#allocation20] sm:$0xff] %v1249_v6  ;;  %v2760_v6 = vld [vmem:[#allocation16 + $0xd4] ss:$8 sps:$4 sm:$0xff]  }
 0x298   :  { %v2758_v7 = vld [vmem:[#allocation16 + $0xd0] ss:$8 sps:$4 sm:$0xff]   ;;  %v2763_v8 = vld [vmem:[#allocation16 + $0xe4] ss:$8 sps:$4 sm:$0xff]   ;;  %v2761_v9 = vld [vmem:[#allocation16 + $0xe0] ss:$8 sps:$4 sm:$0xff]  }
 0x299   :  { %2767 = vpow2.f32 %v1297_v11  ;;  %v2766_v10 = vld [vmem:[#allocation16 + $0xf4] ss:$8 sps:$4 sm:$0xff]   ;;  %v2764_v11 = vld [vmem:[#allocation16 + $0xf0] ss:$8 sps:$4 sm:$0xff]  }
 0x2a3   :  { %v2768_v13 = vpop.eup %2767 }
 0x2a4   :  { %v1303_v14 = vmul.f32 %v2768_v13, %v1294_v12  ;;  %v1819_v12 = vld [vmem:[%s3382_s10] sm:$0x3]  ;;  %s3073_s10 = smov [#allocation18]  }
 0x2a5   :  { %v1824_v16 = vrot.slane %v1819_v12, %v3299_v62  ;;  %s2116_s16 = sshll.u32 %s3073_s10, 4  ;;  %s2117_s16 = int_to_ptr.vmem [resolvable:$true] %s2116_s16 }
 0x2a6   :  { %v1306_v15 = vadd.f32 %v1303_v14, %v1206_v63  ;;  %v2754_v63 = vld [vmem:[#allocation16 + $0xb4] ss:$8 sps:$4 sm:$0xff]   ;;  %s2979_s0 = scalar_lea.vmem %s2117_s16, 384  ;;  %p2984_p3 = scmp.lt.s32.totalorder %s2117_s16, %s2117_s16 }
 0x2a7   :  { %p2980_p2 = scmp.ne.s32.totalorder %s2117_s16, %s2979_s0  ;;  %p2985_p4 = scmp.lt.s32.totalorder %s2979_s0, %s2979_s0 }
 0x2a8   :  { %v1309_v35 = vpack.c.bf16 %v1306_v15, %v1306_v15 }
 0x2a9   :  { %p2986_p5 = por %p2985_p4, %p2984_p3 }
 0x2ab   :  { %p2987_p6 = pnand %p2986_p5, %p2980_p2 }
 0x2d3   :  { %v1287_v20 = vpop.f32.mrb[8].mxu0 }
 0x2d4   :  { %v1288_v21 = vadd.f32 %v1287_v20, %v680_v18  ;;  %v1289_v22 = vpop.f32.mrb[9].mxu0  ;;  %v1828_v20 = vrot.slane %v1819_v12, %v3305_v1 }
 0x2d5   :  { %v1290_v23 = vadd.f32 %v1289_v22, %v684_v19  ;;  %v1291_v24 = vpop.f32.mrb[10].mxu0 }
 0x2d6   :  { %v1299_v25 = vmul.f32 1.442695, %v1288_v21  ;;  %2098 = vst [vmem:[#allocation20 + $0x8] sm:$0xff] %v1288_v21  ;;  %v1292_v26 = vpop.f32.mrb[11].mxu0 }
 0x2d7   :  { %v1301_v27 = vmul.f32 1.442695, %v1290_v23  ;;  %2099 = vst [vmem:[#allocation20 + $0x10] sm:$0xff] %v1290_v23 }
 0x2d8   :  { %2769 = vpow2.f32 %v1299_v25  ;;  %v1490_v57 = vpop.f32.mrb[8].mxu1 }
 0x2d9   :  { %2771 = vpow2.f32 %v1301_v27  ;;  %v1492_v58 = vpop.f32.mrb[9].mxu1 }
 0x2da   :  { %v1494_v60 = vpop.f32.mrb[10].mxu1 }
 0x2e2   :  { %v2770_v30 = vpop.eup %2769 }
 0x2e3   :  { %v2772_v31 = vpop.eup %2771  ;;  %v1304_v32 = vmul.f32 %v2770_v30, %v1295_v28 }
 0x2e4   :  { %v1305_v61 = vmul.f32 %v2772_v31, %v1296_v29 }
 0x2e5   :  { %v1307_v44 = vadd.f32 %v1304_v32, %v1208_v5  ;;  %v2755_v5 = vld [vmem:[#allocation16 + $0xc0] ss:$8 sps:$4 sm:$0xff]  }
 0x2e6   :  { %v1308_v33 = vadd.f32 %v1305_v61, %v1247_v2  ;;  %v1495_v2 = vpop.f32.mrb[11].mxu1 }
 0x2e7   :  { %v1310_v34 = vpack.c.bf16 %v1307_v44, %v1307_v44 }
 0x2e8   :  { %v1311_v36 = vpack.c.bf16 %v1308_v33, %v1308_v33 }
 0x2e9   :  { %1769 = vmatprep.mubr.bf16.mxu0 %v1310_v34 }
 0x2ea   :  { %1770 = vmatmul.mubr.bf16.vlgmr.msra.gmra.mrb[12].mxu0 %v1309_v35  ;;  %1811 = vmatmul.mubr.bf16.vlgmr.msra.gmra.mrb[12].mxu1 %v1311_v36 }
 0x2eb   :  { %2042 = vmatpush1.bf16.msra.mxu1 %v2719_v0 }
 0x2ec   :  { %2043 = vmatprep.subr.bf16.mxu1 %v2724_v37 }
 0x2ef   :  { %2044 = vmatpush1.bf16.msra.mxu1 %v2722_v38 }
 0x2f0   :  { %2045 = vmatprep.subr.bf16.mxu1 %v2727_v39 }
 0x2f3   :  { %2046 = vmatpush1.bf16.msra.mxu1 %v2725_v40 }
 0x2f4   :  { %2047 = vmatprep.subr.bf16.mxu1 %v2730_v41 }
 0x2f7   :  { %2048 = vmatpush1.bf16.msra.mxu1 %v2728_v42 }
 0x2f8   :  { %2049 = vmatprep.subr.bf16.mxu1 %v2733_v43 }
 0x2fb   :  { %2050 = vmatpush1.bf16.msra.mxu1 %v2731_v45 }
 0x2fc   :  { %2051 = vmatprep.subr.bf16.mxu1 %v2736_v46 }
 0x2ff   :  { %2052 = vmatpush1.bf16.msra.mxu1 %v2734_v47 }
 0x300   :  { %2053 = vmatprep.subr.bf16.mxu1 %v2739_v48 }
 0x303   :  { %2054 = vmatpush1.bf16.msra.mxu1 %v2737_v49 }
 0x304   :  { %2055 = vmatprep.subr.bf16.mxu1 %v2742_v50 }
 0x307   :  { %2056 = vmatpush1.bf16.msra.mxu1 %v2740_v51 }
 0x308   :  { %2057 = vmatprep.subr.bf16.mxu1 %v2745_v52 }
 0x30b   :  { %2058 = vmatpush1.bf16.msra.mxu1 %v2743_v53 }
 0x30c   :  { %2059 = vmatprep.subr.bf16.mxu1 %v2748_v54 }
 0x30f   :  { %2060 = vmatpush1.bf16.msra.mxu1 %v2746_v55 }
 0x310   :  { %2061 = vmatprep.subr.bf16.mxu1 %v2751_v56 }
 0x313   :  { %2062 = vmatpush1.bf16.msra.mxu1 %v2749_v59 }
 0x314   :  { %2063 = vmatprep.subr.bf16.mxu1 %v2754_v63 }
 0x317   :  { %2064 = vmatpush1.bf16.msra.mxu1 %v2752_v3 }
 0x318   :  { %2065 = vmatprep.subr.bf16.mxu1 %v2757_v4 }
 0x31b   :  { %2066 = vmatpush1.bf16.msra.mxu1 %v2755_v5 }
 0x31c   :  { %2067 = vmatprep.subr.bf16.mxu1 %v2760_v6 }
 0x31f   :  { %2068 = vmatpush1.bf16.msra.mxu1 %v2758_v7 }
 0x320   :  { %2069 = vmatprep.subr.bf16.mxu1 %v2763_v8 }
 0x323   :  { %2070 = vmatpush1.bf16.msra.mxu1 %v2761_v9 }
 0x324   :  { %2071 = vmatprep.subr.bf16.mxu1 %v2766_v10 }
 0x327   :  { %2072 = vmatpush1.bf16.msra.mxu1 %v2764_v11 }
 0x3bd   :  { %v1771_v13 = vpop.f32.mrb[12].mxu0  ;;  %v1812_v14 = vpop.f32.mrb[12].mxu1 }
 0x3be   :  { %v1772_v15 = vadd.f32 %v1771_v13, %v1490_v57  ;;  %v1773_v17 = vpop.f32.mrb[13].mxu0  ;;  %v1814_v18 = vpop.f32.mrb[13].mxu1 }
 0x3bf   :  { %v1774_v19 = vadd.f32 %v1773_v17, %v1492_v58  ;;  %v1775_v21 = vpop.f32.mrb[14].mxu0  ;;  %v1816_v22 = vpop.f32.mrb[14].mxu1 }
 0x3c0   :  { %v1813_v23 = vadd.f32 %v1812_v14, %v1772_v15  ;;  %v1776_v24 = vpop.f32.mrb[15].mxu0  ;;  %v1817_v25 = vpop.f32.mrb[15].mxu1 }
 0x3c1   :  { %v1815_v26 = vadd.f32 %v1814_v18, %v1774_v19 }
 0x3c2   :  { %v1831_v27 = vadd.f32 %v1824_v16, %v1813_v23 }
 0x3c3   :  { %v1832_v28 = vadd.f32 %v1828_v20, %v1815_v26 }
 0x3c4   :  { %v1833_v29 = vmax.f32 %v1831_v27, 0.0 }
 0x3c5   :  { %v1834_v30 = vmax.f32 %v1832_v28, 0.0 }
 0x3c6   :  { %v1835_v32 = vpack.c.bf16 %v1833_v29, %v1833_v29 }
 0x3c7   :  { %v1836_v31 = vpack.c.bf16 %v1834_v30, %v1834_v30 }
 0x3c9   :  { %2073 = vmatprep.mubr.bf16.mxu1 %v1836_v31 }
 0x3ca   :  { %2074 = vmatmul.mubr.bf16.vlgmr.msra.gmra.mrb[16].mxu1 %v1835_v32 }
 0x3cb   :  { %2990 = shalt.err (!%p2987_p6)
}
 0x3cc   :  { %s2991_s20 = scalar_lea.hbm %s3386_s14, 384 }
 0x3cd   :  { %p2992_p7 = scmp.ne.s32.totalorder %s3386_s14, %s2991_s20  ;;  %p2995_p8 = scmp.lt.u32.totalorder %s2991_s20, %s3386_s14 }
 0x3cf   :  { %p2997_p9 = pnand %p2995_p8, %p2992_p7 }
 0x3d1   :  { %3000 = shalt.err (!%p2997_p9)
}
 0x3d2   :  { %2119 = dma.vmem_to_hbm [thread:$0]  %s2117_s16, 384, %s3386_s14, [#allocation19]  }
 0x3d3   :  { %s3074_s25 = smov [#allocation20]  }
 0x3d4   :  { %s2126_s3 = sshll.u32 %s3074_s25, 4  ;;  %s2127_s3 = int_to_ptr.vmem [resolvable:$true] %s2126_s3 }
 0x3d5   :  { %s3001_s21 = scalar_lea.vmem %s2127_s3, 384  ;;  %p3006_p11 = scmp.lt.s32.totalorder %s2127_s3, %s2127_s3 }
 0x3d6   :  { %p3002_p10 = scmp.ne.s32.totalorder %s2127_s3, %s3001_s21  ;;  %p3007_p12 = scmp.lt.s32.totalorder %s3001_s21, %s3001_s21 }
 0x3d8   :  { %p3008_p13 = por %p3007_p12, %p3006_p11 }
 0x3da   :  { %p3009_p0 = pnand %p3008_p13, %p3002_p10 }
 0x3dc   :  { %3012 = shalt.err (!%p3009_p0)
}
 0x3dd   :  { %s3013_s26 = scalar_lea.hbm %s3387_s15, 384 }
 0x3de   :  { %p3014_p1 = scmp.ne.s32.totalorder %s3387_s15, %s3013_s26  ;;  %p3017_p2 = scmp.lt.u32.totalorder %s3013_s26, %s3387_s15 }
 0x3e0   :  { %p3019_p3 = pnand %p3017_p2, %p3014_p1 }
 0x3e2   :  { %3022 = shalt.err (!%p3019_p3)
}
 0x3e3   :  { %2129 = dma.vmem_to_hbm [thread:$0]  %s2127_s3, 384, %s3387_s15, [#allocation19]   ;;  %v1869_v61 = vld [vmem:[%s3384_s12] sm:$0x3] }
 0x3e4   :  { %v1874_v44 = vrot.slane %v1869_v61, %v3299_v62  ;;  %v1878_v33 = vrot.slane %v1869_v61, %v3305_v1  ;;  %s3075_s12 = smov [#allocation17]  }
 0x3e5   :  { %s2106_s15 = sshll.u32 %s3075_s12, 4  ;;  %s2107_s15 = int_to_ptr.vmem [resolvable:$true] %s2106_s15 }
 0x3e6   :  { %s3023_s7 = scalar_lea.vmem %s2107_s15, 256  ;;  %p3028_p5 = scmp.lt.s32.totalorder %s2107_s15, %s2107_s15 }
 0x3e7   :  { %p3024_p4 = scmp.ne.s32.totalorder %s2107_s15, %s3023_s7  ;;  %p3029_p6 = scmp.lt.s32.totalorder %s3023_s7, %s3023_s7 }
 0x3e9   :  { %p3030_p7 = por %p3029_p6, %p3028_p5 }
 0x3eb   :  { %p3031_p8 = pnand %p3030_p7, %p3024_p4 }
 0x49d   :  { %v2075_v34 = vpop.f32.mrb[16].mxu1 }
 0x49e   :  { %v2076_v0 = vadd.f32 %v2075_v34, %v1874_v44  ;;  %v2077_v35 = vpop.f32.mrb[17].mxu1 }
 0x49f   :  { %v2078_v36 = vadd.f32 %v2077_v35, %v1878_v33  ;;  %v2079_v37 = vpop.f32.mrb[18].mxu1 }
 0x4a0   :  { %v2082_v38 = vsub.f32 0.0, %v2076_v0  ;;  %v2080_v39 = vpop.f32.mrb[19].mxu1 }
 0x4a1   :  { %v2083_v40 = vsub.f32 0.0, %v2078_v36 }
 0x4a2   :  { %v2084_v41 = vmul.f32 1.442695, %v2082_v38 }
 0x4a3   :  { %v2086_v42 = vmul.f32 1.442695, %v2083_v40 }
 0x4a4   :  { %2773 = vpow2.f32 %v2084_v41 }
 0x4a5   :  { %2775 = vpow2.f32 %v2086_v42 }
 0x4ae   :  { %v2774_v43 = vpop.eup %2773 }
 0x4af   :  { %v2776_v45 = vpop.eup %2775  ;;  %v2088_v46 = vadd.f32 1.0, %v2774_v43 }
 0x4b0   :  { %v2089_v47 = vadd.f32 1.0, %v2776_v45 }
 0x4b1   :  { %2777 = vrcp.f32 %v2088_v46 }
 0x4b2   :  { %2779 = vrcp.f32 %v2089_v47 }
 0x4bb   :  { %v2778_v62 = vpop.eup %2777 }
 0x4bc   :  { %v2780_v1 = vpop.eup %2779  ;;  %2092 = vst [vmem:[#allocation17] sm:$0xff] %v2778_v62 }
 0x4bd   :  { %2093 = vst [vmem:[#allocation17 + $0x8] sm:$0xff] %v2780_v1 }
 0x4be   :  { %3034 = shalt.err (!%p3031_p8)
}
 0x4bf   :  { %s3035_s16 = scalar_lea.hbm %s3385_s13, 256 }
 0x4c0   :  { %p3036_p9 = scmp.ne.s32.totalorder %s3385_s13, %s3035_s16  ;;  %p3039_p10 = scmp.lt.u32.totalorder %s3035_s16, %s3385_s13 }
 0x4c2   :  { %p3041_p11 = pnand %p3039_p10, %p3036_p9 }
 0x4c4   :  { %3044 = shalt.err (!%p3041_p11)
}
 0x4c5   :  { %2109 = dma.vmem_to_hbm [thread:$0]  %s2107_s15, 256, %s3385_s13, [#allocation4]  }
 0x4c6   :  { %3055 = dma.done.wait [#allocation4], 256  }
 0x4c7   :  { %3056 = vsyncadd [#allocation4], 4294967040 }
 0x4c8   :  { %3057 = dma.done.wait [#allocation19], 768  }
 0x4c9   :  { %3058 = vsyncadd [#allocation19], 4294966528 }
 0x4ca   :  { %2139 = vsyncpa [#allocation3], 1 }
 0x4cb   :  { %2140 = vsyncpa [#allocation6], 1 }
 0x4cc   :  { %2141 = vsyncpa [#allocation9], 1 }
 0x4cd   :  { %2142 = vsyncpa [#allocation12], 1 }
 0x4ce   :  { %2143 = vsyncpa [#allocation15], 1 }
 0x4cf   :  { %2144 = vsyncpa [#allocation4], 1 }
 0x4d0   :  { %2145 = vsyncpa [#allocation19], 1 }

</bundles_post_ra>
